<compile_context>
chip_gen: v6e
topology: v6e:2x2x1
jax: 0.10.0
libtpu: 0.0.40
codegen_flags: <defaults>
</compile_context>

<pallas_src>
import functools
import math

import jax
import jax.numpy as jnp
from jax.experimental import pallas as pl
from jax.experimental.pallas import tpu as pltpu


def _amnet_kernel(K, F_num,
                  g_ref,                                   # SMEM (F*(K+1),): folded filter coeffs
                  x_ref, a_ref,                            # (NP, IP), (NP, NP)
                  w1_ref, b1_ref, w2_ref, b2_ref,          # linear_transform_in
                  fb_ref,                                  # (F, HP) per-filter bias
                  wf_ref, bf_ref, wx_ref, bx_ref,          # W_f / W_x attention projections
                  wc_ref, bc_ref,                          # classification head
                  res_ref, logit_ref):                     # (NP, HP), (NP, CP) outputs
    # Hoist all SMEM scalar reads ahead of the vector-heavy phase.
    g = [[g_ref[f * (K + 1) + j] for j in range(K + 1)] for f in range(F_num)]

    x0 = x_ref[...]
    A = a_ref[...]

    # linear_transform_in: Linear -> ReLU -> Linear
    h = jnp.dot(x0, w1_ref[...], preferred_element_type=jnp.float32) + b1_ref[...]
    h = jnp.maximum(h, 0.0)
    x = jnp.dot(h, w2_ref[...], preferred_element_type=jnp.float32) + b2_ref[...]    # (NP, HP) = p_0

    # Power iteration p_j = A_hat^j x : exactly K large MXU matmuls.
    p = [x]
    for _ in range(K):
        p.append(jnp.dot(A, p[-1], preferred_element_type=jnp.float32))

    # Per-filter Bernstein output h_f = sum_j g[f, j] * p_j + fb[f]  (VPU scalar-splat MACs).
    h_list = []
    for f in range(F_num):
        h_f = g[f][0] * p[0]
        for j in range(1, K + 1):
            h_f = h_f + g[f][j] * p[j]
        h_list.append(h_f + fb_ref[f:f + 1, :])

    # Attention: batch the F per-filter projections into a single (F*N, HP) @ (HP, HP) matmul.
    h_all = jnp.concatenate(h_list, axis=0)                                           # (F*NP, HP)
    proj_all = jnp.tanh(jnp.dot(h_all, wf_ref[...],
                                preferred_element_type=jnp.float32) + bf_ref[...])
    x_proj = jnp.tanh(jnp.dot(x, wx_ref[...],
                              preferred_element_type=jnp.float32) + bx_ref[...])      # (NP, HP)

    NP = x.shape[0]
    logit_list = [
        jnp.sum(proj_all[f * NP:(f + 1) * NP] * x_proj, axis=-1, keepdims=True)       # (NP, 1)
        for f in range(F_num)
    ]

    # Softmax over the filter dimension (reciprocal on the EUP slot).
    m = logit_list[0]
    for f in range(1, F_num):
        m = jnp.maximum(m, logit_list[f])
    exps = [jnp.exp(l - m) for l in logit_list]
    denom = exps[0]
    for f in range(1, F_num):
        denom = denom + exps[f]
    inv = pl.reciprocal(denom, approx=True)

    res = h_list[0] * (exps[0] * inv)
    for f in range(1, F_num):
        res = res + h_list[f] * (exps[f] * inv)
    res_ref[...] = res                                                                # lane-dense store

    # Fused classification head (dropout = identity at inference); log_softmax stays in the wrapper.
    logit_ref[...] = jnp.dot(res, wc_ref[...],
                             preferred_element_type=jnp.float32) + bc_ref[...]        # lane-dense store


def _round_up(v, m):
    return ((v + m - 1) // m) * m


def _pad2(a, rows, cols):
    return jnp.pad(a, ((0, rows - a.shape[0]), (0, cols - a.shape[1])))


def amnet_forward(params, x, a_hat):
    coef = params["coef"]                         # (F, K+1) = C(K,i)/2^K * theta
    F_num, Kp1 = coef.shape
    K = Kp1 - 1
    N, in_ch = x.shape
    H = params["w2"].shape[1]
    num_class = params["wc"].shape[1]

    # Fold the Bernstein basis into powers of A_hat:
    #   (I - A)^i (I + A)^{K-i} = sum_j c[i, j] A^j  (the two factors commute).
    c = [[0.0] * Kp1 for _ in range(Kp1)]
    for i in range(Kp1):
        for a in range(i + 1):
            for b in range(K - i + 1):
                c[i][a + b] += math.comb(i, a) * ((-1.0) ** a) * math.comb(K - i, b)
    g = (coef @ jnp.asarray(c, jnp.float32)).reshape(-1)     # (F*(K+1),), flattened 1-D for SMEM

    # Zero-pad: feature/class dims to multiples of 128 (lane-dense), node dim to a multiple of 8.
    IP, HP, CP = _round_up(in_ch, 128), _round_up(H, 128), _round_up(num_class, 128)
    NP = _round_up(N, 8)
    x_p = _pad2(x, NP, IP)
    a_p = _pad2(a_hat, NP, NP)
    w1 = _pad2(params["w1"], IP, HP); b1 = _pad2(params["b1"], 1, HP)
    w2 = _pad2(params["w2"], HP, HP); b2 = _pad2(params["b2"], 1, HP)
    fb = _pad2(params["fb"], F_num, HP)
    wf = _pad2(params["wf"], HP, HP); bf = _pad2(params["bf"], 1, HP)
    wx = _pad2(params["wx"], HP, HP); bx = _pad2(params["bx"], 1, HP)
    wc = _pad2(params["wc"], HP, CP); bc = _pad2(params["bc"], 1, CP)

    kernel = functools.partial(_amnet_kernel, K, F_num)
    vmem = pl.BlockSpec(memory_space=pltpu.MemorySpace.VMEM)
    smem = pl.BlockSpec(memory_space=pltpu.MemorySpace.SMEM)

    res_p, logits_p = pl.pallas_call(
        kernel,
        out_shape=(jax.ShapeDtypeStruct((NP, HP), jnp.float32),
                   jax.ShapeDtypeStruct((NP, CP), jnp.float32)),
        in_specs=[smem] + [vmem] * 13,
        out_specs=(vmem, vmem),
        compiler_params=pltpu.CompilerParams(vmem_limit_bytes=64 * 1024 * 1024),
    )(g, x_p, a_p, w1, b1, w2, b2, fb, wf, bf, wx, bx, wc, bc)

    res = res_p[:N, :H]
    y_hat = jax.nn.log_softmax(logits_p[:N, :num_class], axis=-1)
    return res, y_hat


def amnet_ref(params, x, a_hat):
    """Pure-JAX reference mirroring the PyTorch forward (eval mode)."""
    coef = params["coef"]
    F_num, Kp1 = coef.shape
    K = Kp1 - 1
    h = jnp.maximum(x @ params["w1"] + params["b1"], 0.0)
    xh = h @ params["w2"] + params["b2"]
    terms = []
    for i in range(K + 1):
        t = xh
        for _ in range(K - i):
            t = t + a_hat @ t
        for _ in range(i):
            t = t - a_hat @ t
        terms.append(t)
    h_filters = []
    for f in range(F_num):
        h_f = sum(coef[f, i] * terms[i] for i in range(K + 1)) + params["fb"][f]
        h_filters.append(h_f)
    h_filters = jnp.stack(h_filters, axis=1)                      # (N, F, H)
    hproj = jnp.tanh(h_filters @ params["wf"] + params["bf"])
    xproj = jnp.tanh(xh @ params["wx"] + params["bx"])
    logits = jnp.einsum("nfh,nh->nf", hproj, xproj)
    score = jax.nn.softmax(logits, axis=1)[..., None]             # (N, F, 1)
    res = jnp.sum(h_filters * score, axis=1)
    y = res @ params["wc"] + params["bc"]
    y = jax.nn.log_softmax(y, axis=-1)
    return res, y


def _linear_init(key, fan_in, fan_out):
    kw, kb = jax.random.split(key)
    bound = 1.0 / math.sqrt(fan_in)
    w = jax.random.uniform(kw, (fan_in, fan_out), jnp.float32, -bound, bound)
    b = jax.random.uniform(kb, (1, fan_out), jnp.float32, -bound, bound)
    return w, b


if __name__ == "__main__":
    # Small shapes consistent with the module.
    N, IN_CH, HID, NUM_CLASS, K, FILTER_NUM = 64, 16, 32, 2, 3, 2
    NUM_EDGES = 256

    key = jax.random.PRNGKey(0)
    keys = jax.random.split(key, 12)

    # node features + random graph (edge_index) -> dense symmetric-normalized adjacency
    x = jax.random.normal(keys[0], (N, IN_CH), jnp.float32)
    src = jax.random.randint(keys[1], (NUM_EDGES,), 0, N)
    dst = jax.random.randint(keys[2], (NUM_EDGES,), 0, N)
    A = jnp.zeros((N, N), jnp.float32).at[src, dst].set(1.0)
    A = jnp.maximum(A, A.T) * (1.0 - jnp.eye(N, dtype=jnp.float32))   # undirected, no self-loops
    deg = A.sum(axis=1)
    dinv = jnp.where(deg > 0, 1.0 / jnp.sqrt(deg), 0.0)
    a_hat = dinv[:, None] * A * dinv[None, :]

    # deterministic parameter init (PyTorch-Linear-style uniform)
    w1, b1 = _linear_init(keys[3], IN_CH, HID)
    w2, b2 = _linear_init(keys[4], HID, HID)
    wf, bf = _linear_init(keys[5], HID, HID)
    wx, bx = _linear_init(keys[6], HID, HID)
    wc, bc = _linear_init(keys[7], HID, NUM_CLASS)
    theta = jax.random.uniform(keys[8], (FILTER_NUM, K + 1), jnp.float32, 0.0, 2.0)
    fb = jax.random.uniform(keys[9], (FILTER_NUM, HID), jnp.float32, -0.1, 0.1)

    binom = jnp.array([math.comb(K, i) / (2.0 ** K) for i in range(K + 1)], jnp.float32)
    coef = theta * binom[None, :]                                  # (F, K+1)

    params = dict(coef=coef, w1=w1, b1=b1, w2=w2, b2=b2, fb=fb,
                  wf=wf, bf=bf, wx=wx, bx=bx, wc=wc, bc=bc)

    res, y_hat = amnet_forward(params, x, a_hat)
    res = jax.block_until_ready(res)
    y_hat = jax.block_until_ready(y_hat)

    res_r, y_r = amnet_ref(params, x, a_hat)
    assert res.shape == (N, HID) and y_hat.shape == (N, NUM_CLASS)
    assert jnp.allclose(res, res_r, atol=1e-2, rtol=1e-2)
    assert jnp.allclose(y_hat, y_r, atol=1e-2, rtol=1e-2)

    print("KERNEL_OK")
</pallas_src>

<mosaic_0001>
module attributes {stable_mosaic.version = 11 : i64} {
  func.func @_amnet_kernel(%arg0: memref<8xf32, #tpu.memory_space<smem>>, %arg1: memref<64x128xf32, #tpu.memory_space<vmem>>, %arg2: memref<64x64xf32, #tpu.memory_space<vmem>>, %arg3: memref<128x128xf32, #tpu.memory_space<vmem>>, %arg4: memref<1x128xf32, #tpu.memory_space<vmem>>, %arg5: memref<128x128xf32, #tpu.memory_space<vmem>>, %arg6: memref<1x128xf32, #tpu.memory_space<vmem>>, %arg7: memref<2x128xf32, #tpu.memory_space<vmem>>, %arg8: memref<128x128xf32, #tpu.memory_space<vmem>>, %arg9: memref<1x128xf32, #tpu.memory_space<vmem>>, %arg10: memref<128x128xf32, #tpu.memory_space<vmem>>, %arg11: memref<1x128xf32, #tpu.memory_space<vmem>>, %arg12: memref<128x128xf32, #tpu.memory_space<vmem>>, %arg13: memref<1x128xf32, #tpu.memory_space<vmem>>, %arg14: memref<64x128xf32, #tpu.memory_space<vmem>>, %arg15: memref<64x128xf32, #tpu.memory_space<vmem>>) attributes {dimension_semantics = [], scalar_prefetch = 0 : i64, scratch_operands = 0 : i64, tpu.core_type = #tpu.core_type<tc>} {
    %c0 = arith.constant 0 : index
    %0 = memref.load %arg0[%c0] : memref<8xf32, #tpu.memory_space<smem>>
    %c1 = arith.constant 1 : index
    %1 = memref.load %arg0[%c1] : memref<8xf32, #tpu.memory_space<smem>>
    %c2 = arith.constant 2 : index
    %2 = memref.load %arg0[%c2] : memref<8xf32, #tpu.memory_space<smem>>
    %c3 = arith.constant 3 : index
    %3 = memref.load %arg0[%c3] : memref<8xf32, #tpu.memory_space<smem>>
    %c4 = arith.constant 4 : index
    %4 = memref.load %arg0[%c4] : memref<8xf32, #tpu.memory_space<smem>>
    %c5 = arith.constant 5 : index
    %5 = memref.load %arg0[%c5] : memref<8xf32, #tpu.memory_space<smem>>
    %c6 = arith.constant 6 : index
    %6 = memref.load %arg0[%c6] : memref<8xf32, #tpu.memory_space<smem>>
    %c7 = arith.constant 7 : index
    %7 = memref.load %arg0[%c7] : memref<8xf32, #tpu.memory_space<smem>>
    %c0_0 = arith.constant 0 : index
    %c0_1 = arith.constant 0 : index
    %8 = vector.load %arg1[%c0_0, %c0_1] : memref<64x128xf32, #tpu.memory_space<vmem>>, vector<64x128xf32>
    %c0_2 = arith.constant 0 : index
    %c0_3 = arith.constant 0 : index
    %9 = vector.load %arg2[%c0_2, %c0_3] : memref<64x64xf32, #tpu.memory_space<vmem>>, vector<64x64xf32>
    %c0_4 = arith.constant 0 : index
    %c0_5 = arith.constant 0 : index
    %10 = vector.load %arg3[%c0_4, %c0_5] : memref<128x128xf32, #tpu.memory_space<vmem>>, vector<128x128xf32>
    %cst = arith.constant dense<0.000000e+00> : vector<64x128xf32>
    %11 = tpu.matmul %8, %10, %cst {dimension_numbers = #tpu.dot_dimension_numbers<[1], [0], [0], [1], [0, 0, 1, 1], [], []>} : vector<64x128xf32>, vector<128x128xf32>, vector<64x128xf32> -> vector<64x128xf32>
    %c0_6 = arith.constant 0 : index
    %c0_7 = arith.constant 0 : index
    %12 = vector.load %arg4[%c0_6, %c0_7] : memref<1x128xf32, #tpu.memory_space<vmem>>, vector<1x128xf32>
    %13 = vector.broadcast %12 : vector<1x128xf32> to vector<64x128xf32>
    %14 = arith.addf %11, %13 : vector<64x128xf32>
    %cst_8 = arith.constant 0.000000e+00 : f32
    %15 = vector.broadcast %cst_8 : f32 to vector<64x128xf32>
    %16 = arith.maximumf %14, %15 : vector<64x128xf32>
    %c0_9 = arith.constant 0 : index
    %c0_10 = arith.constant 0 : index
    %17 = vector.load %arg5[%c0_9, %c0_10] : memref<128x128xf32, #tpu.memory_space<vmem>>, vector<128x128xf32>
    %cst_11 = arith.constant dense<0.000000e+00> : vector<64x128xf32>
    %18 = tpu.matmul %16, %17, %cst_11 {dimension_numbers = #tpu.dot_dimension_numbers<[1], [0], [0], [1], [0, 0, 1, 1], [], []>} : vector<64x128xf32>, vector<128x128xf32>, vector<64x128xf32> -> vector<64x128xf32>
    %c0_12 = arith.constant 0 : index
    %c0_13 = arith.constant 0 : index
    %19 = vector.load %arg6[%c0_12, %c0_13] : memref<1x128xf32, #tpu.memory_space<vmem>>, vector<1x128xf32>
    %20 = vector.broadcast %19 : vector<1x128xf32> to vector<64x128xf32>
    %21 = arith.addf %18, %20 : vector<64x128xf32>
    %cst_14 = arith.constant dense<0.000000e+00> : vector<64x128xf32>
    %22 = tpu.matmul %9, %21, %cst_14 {dimension_numbers = #tpu.dot_dimension_numbers<[1], [0], [0], [1], [0, 0, 1, 1], [], []>} : vector<64x64xf32>, vector<64x128xf32>, vector<64x128xf32> -> vector<64x128xf32>
    %cst_15 = arith.constant dense<0.000000e+00> : vector<64x128xf32>
    %23 = tpu.matmul %9, %22, %cst_15 {dimension_numbers = #tpu.dot_dimension_numbers<[1], [0], [0], [1], [0, 0, 1, 1], [], []>} : vector<64x64xf32>, vector<64x128xf32>, vector<64x128xf32> -> vector<64x128xf32>
    %cst_16 = arith.constant dense<0.000000e+00> : vector<64x128xf32>
    %24 = tpu.matmul %9, %23, %cst_16 {dimension_numbers = #tpu.dot_dimension_numbers<[1], [0], [0], [1], [0, 0, 1, 1], [], []>} : vector<64x64xf32>, vector<64x128xf32>, vector<64x128xf32> -> vector<64x128xf32>
    %25 = vector.broadcast %0 : f32 to vector<64x128xf32>
    %26 = arith.mulf %25, %21 : vector<64x128xf32>
    %27 = vector.broadcast %1 : f32 to vector<64x128xf32>
    %28 = arith.mulf %27, %22 : vector<64x128xf32>
    %29 = arith.addf %26, %28 : vector<64x128xf32>
    %30 = vector.broadcast %2 : f32 to vector<64x128xf32>
    %31 = arith.mulf %30, %23 : vector<64x128xf32>
    %32 = arith.addf %29, %31 : vector<64x128xf32>
    %33 = vector.broadcast %3 : f32 to vector<64x128xf32>
    %34 = arith.mulf %33, %24 : vector<64x128xf32>
    %35 = arith.addf %32, %34 : vector<64x128xf32>
    %c0_17 = arith.constant 0 : index
    %c0_18 = arith.constant 0 : index
    %36 = vector.load %arg7[%c0_17, %c0_18] : memref<2x128xf32, #tpu.memory_space<vmem>>, vector<1x128xf32>
    %37 = vector.broadcast %36 : vector<1x128xf32> to vector<64x128xf32>
    %38 = arith.addf %35, %37 : vector<64x128xf32>
    %39 = vector.broadcast %4 : f32 to vector<64x128xf32>
    %40 = arith.mulf %39, %21 : vector<64x128xf32>
    %41 = vector.broadcast %5 : f32 to vector<64x128xf32>
    %42 = arith.mulf %41, %22 : vector<64x128xf32>
    %43 = arith.addf %40, %42 : vector<64x128xf32>
    %44 = vector.broadcast %6 : f32 to vector<64x128xf32>
    %45 = arith.mulf %44, %23 : vector<64x128xf32>
    %46 = arith.addf %43, %45 : vector<64x128xf32>
    %47 = vector.broadcast %7 : f32 to vector<64x128xf32>
    %48 = arith.mulf %47, %24 : vector<64x128xf32>
    %49 = arith.addf %46, %48 : vector<64x128xf32>
    %c1_19 = arith.constant 1 : index
    %c0_20 = arith.constant 0 : index
    %50 = vector.load %arg7[%c1_19, %c0_20] : memref<2x128xf32, #tpu.memory_space<vmem>>, vector<1x128xf32>
    %51 = vector.broadcast %50 : vector<1x128xf32> to vector<64x128xf32>
    %52 = arith.addf %49, %51 : vector<64x128xf32>
    %53 = tpu.concatenate %38, %52 in 0 : vector<64x128xf32>, vector<64x128xf32> -> vector<128x128xf32>
    %c0_21 = arith.constant 0 : index
    %c0_22 = arith.constant 0 : index
    %54 = vector.load %arg8[%c0_21, %c0_22] : memref<128x128xf32, #tpu.memory_space<vmem>>, vector<128x128xf32>
    %cst_23 = arith.constant dense<0.000000e+00> : vector<128x128xf32>
    %55 = tpu.matmul %53, %54, %cst_23 {dimension_numbers = #tpu.dot_dimension_numbers<[1], [0], [0], [1], [0, 0, 1, 1], [], []>} : vector<128x128xf32>, vector<128x128xf32>, vector<128x128xf32> -> vector<128x128xf32>
    %c0_24 = arith.constant 0 : index
    %c0_25 = arith.constant 0 : index
    %56 = vector.load %arg9[%c0_24, %c0_25] : memref<1x128xf32, #tpu.memory_space<vmem>>, vector<1x128xf32>
    %57 = vector.broadcast %56 : vector<1x128xf32> to vector<128x128xf32>
    %58 = arith.addf %55, %57 : vector<128x128xf32>
    %59 = math.tanh %58 : vector<128x128xf32>
    %c0_26 = arith.constant 0 : index
    %c0_27 = arith.constant 0 : index
    %60 = vector.load %arg10[%c0_26, %c0_27] : memref<128x128xf32, #tpu.memory_space<vmem>>, vector<128x128xf32>
    %cst_28 = arith.constant dense<0.000000e+00> : vector<64x128xf32>
    %61 = tpu.matmul %21, %60, %cst_28 {dimension_numbers = #tpu.dot_dimension_numbers<[1], [0], [0], [1], [0, 0, 1, 1], [], []>} : vector<64x128xf32>, vector<128x128xf32>, vector<64x128xf32> -> vector<64x128xf32>
    %c0_29 = arith.constant 0 : index
    %c0_30 = arith.constant 0 : index
    %62 = vector.load %arg11[%c0_29, %c0_30] : memref<1x128xf32, #tpu.memory_space<vmem>>, vector<1x128xf32>
    %63 = vector.broadcast %62 : vector<1x128xf32> to vector<64x128xf32>
    %64 = arith.addf %61, %63 : vector<64x128xf32>
    %65 = math.tanh %64 : vector<64x128xf32>
    %66 = vector.extract_strided_slice %59 {offsets = [0, 0], sizes = [64, 128], strides = [1, 1]} : vector<128x128xf32> to vector<64x128xf32>
    %67 = arith.mulf %66, %65 : vector<64x128xf32>
    %cst_31 = arith.constant dense<0.000000e+00> : vector<64xf32>
    %68 = vector.multi_reduction <add>, %67, %cst_31 [1] : vector<64x128xf32> to vector<64xf32>
    %69 = vector.shape_cast %68 : vector<64xf32> to vector<64x1xf32>
    %70 = vector.extract_strided_slice %59 {offsets = [64, 0], sizes = [64, 128], strides = [1, 1]} : vector<128x128xf32> to vector<64x128xf32>
    %71 = arith.mulf %70, %65 : vector<64x128xf32>
    %cst_32 = arith.constant dense<0.000000e+00> : vector<64xf32>
    %72 = vector.multi_reduction <add>, %71, %cst_32 [1] : vector<64x128xf32> to vector<64xf32>
    %73 = vector.shape_cast %72 : vector<64xf32> to vector<64x1xf32>
    %74 = arith.maximumf %69, %73 : vector<64x1xf32>
    %75 = arith.subf %69, %74 : vector<64x1xf32>
    %76 = math.exp %75 : vector<64x1xf32>
    %77 = arith.subf %73, %74 : vector<64x1xf32>
    %78 = math.exp %77 : vector<64x1xf32>
    %79 = arith.addf %76, %78 : vector<64x1xf32>
    %80 = tpu.reciprocal %79 {approx = true} : vector<64x1xf32> -> vector<64x1xf32>
    %81 = arith.mulf %76, %80 : vector<64x1xf32>
    %82 = vector.broadcast %81 : vector<64x1xf32> to vector<64x128xf32>
    %83 = arith.mulf %38, %82 : vector<64x128xf32>
    %84 = arith.mulf %78, %80 : vector<64x1xf32>
    %85 = vector.broadcast %84 : vector<64x1xf32> to vector<64x128xf32>
    %86 = arith.mulf %52, %85 : vector<64x128xf32>
    %87 = arith.addf %83, %86 : vector<64x128xf32>
    %c0_33 = arith.constant 0 : index
    %c0_34 = arith.constant 0 : index
    %88 = vector.load %arg14[%c0_33, %c0_34] : memref<64x128xf32, #tpu.memory_space<vmem>>, vector<64x128xf32>
    tpu.vector_store %arg14[%c0_33, %c0_34], %87 {strides = array<i32>} : memref<64x128xf32, #tpu.memory_space<vmem>>, vector<64x128xf32>,
    %c0_35 = arith.constant 0 : index
    %c0_36 = arith.constant 0 : index
    %89 = vector.load %arg12[%c0_35, %c0_36] : memref<128x128xf32, #tpu.memory_space<vmem>>, vector<128x128xf32>
    %cst_37 = arith.constant dense<0.000000e+00> : vector<64x128xf32>
    %90 = tpu.matmul %87, %89, %cst_37 {dimension_numbers = #tpu.dot_dimension_numbers<[1], [0], [0], [1], [0, 0, 1, 1], [], []>} : vector<64x128xf32>, vector<128x128xf32>, vector<64x128xf32> -> vector<64x128xf32>
    %c0_38 = arith.constant 0 : index
    %c0_39 = arith.constant 0 : index
    %91 = vector.load %arg13[%c0_38, %c0_39] : memref<1x128xf32, #tpu.memory_space<vmem>>, vector<1x128xf32>
    %92 = vector.broadcast %91 : vector<1x128xf32> to vector<64x128xf32>
    %93 = arith.addf %90, %92 : vector<64x128xf32>
    %c0_40 = arith.constant 0 : index
    %c0_41 = arith.constant 0 : index
    %94 = vector.load %arg15[%c0_40, %c0_41] : memref<64x128xf32, #tpu.memory_space<vmem>>, vector<64x128xf32>
    tpu.vector_store %arg15[%c0_40, %c0_41], %93 {strides = array<i32>} : memref<64x128xf32, #tpu.memory_space<vmem>>, vector<64x128xf32>,
    return
  }
}

</mosaic_0001>

<bundles_post_ra>
// kernel: tpu_custom_call.1
= control target key start
LH: loop header
LB: loop body
LE: loop exit
PB: predicated region body
PF: predicated region fallthrough
CT: control target
= control target key end

     0   :  { %21 = vsyncpa [#allocation5], 0  ;;  %s2977_s0 = inlined_call_operand.hbm [shape: f32[8], index: 0, kind: input, shape index: {}]   ;;  %s2978_s1 = inlined_call_operand.hbm [shape: f32[64,128], index: 1, kind: input, shape index: {}]   ;;  %s2979_s2 = inlined_call_operand.hbm [shape: f32[64,64], index: 2, kind: input, shape index: {}]   ;;  %s2980_s3 = inlined_call_operand.hbm [shape: f32[128,128], index: 3, kind: input, shape index: {}]   ;;  %s2981_s4 = inlined_call_operand.vmem [shape: f32[1,128], index: 4, kind: input, shape index: {}]   ;;  %s2982_s5 = inlined_call_operand.hbm [shape: f32[128,128], index: 5, kind: input, shape index: {}]   ;;  %s2983_s6 = inlined_call_operand.vmem [shape: f32[1,128], index: 6, kind: input, shape index: {}]   ;;  %s2984_s7 = inlined_call_operand.vmem [shape: f32[2,128], index: 7, kind: input, shape index: {}]   ;;  %s2985_s8 = inlined_call_operand.hbm [shape: f32[128,128], index: 8, kind: input, shape index: {}]   ;;  %s2986_s9 = inlined_call_operand.vmem [shape: f32[1,128], index: 9, kind: input, shape index: {}]   ;;  %s2987_s10 = inlined_call_operand.hbm [shape: f32[128,128], index: 10, kind: input, shape index: {}]   ;;  %s2988_s11 = inlined_call_operand.vmem [shape: f32[1,128], index: 11, kind: input, shape index: {}]   ;;  %s2989_s12 = inlined_call_operand.hbm [shape: f32[128,128], index: 12, kind: input, shape index: {}]   ;;  %s2990_s13 = inlined_call_operand.vmem [shape: f32[1,128], index: 13, kind: input, shape index: {}]   ;;  %s2991_s14 = inlined_call_operand.hbm [shape: f32[64,128], index: 14, kind: output, shape index: {0}]   ;;  %s2992_s15 = inlined_call_operand.hbm [shape: f32[64,128], index: 15, kind: output, shape index: {1}]  }
   0x1   :  { %22 = vsyncpa [#allocation3], 0 }
   0x2   :  { %23 = vsyncpa [#allocation8], 0 }
   0x3   :  { %24 = vsyncpa [#allocation11], 0 }
   0x4   :  { %25 = vsyncpa [#allocation14], 0 }
   0x5   :  { %26 = vsyncpa [#allocation4], 0 }
   0x6   :  { %27 = vsyncpa [#allocation18], 0  ;;  %s2432_s18 = smov [#allocation7]   ;;  %s2433_s20 = smov [#allocation10]  }
   0x7   :  { %s53_s19 = sshll.u32 %s2432_s18, 4  ;;  %s79_s21 = sshll.u32 %s2433_s20, 4  ;;  %s54_s19 = int_to_ptr.vmem [resolvable:$true] %s53_s19  ;;  %s80_s21 = int_to_ptr.vmem [resolvable:$true] %s79_s21 }
   0x8   :  { %s2238_s22 = scalar_lea.vmem %s54_s19, 1024  ;;  %p2243_p1 = scmp.lt.s32.totalorder %s54_s19, %s54_s19 }
   0x9   :  { %p2239_p0 = scmp.ne.s32.totalorder %s54_s19, %s2238_s22  ;;  %p2244_p2 = scmp.lt.s32.totalorder %s2238_s22, %s2238_s22 }
   0xb   :  { %p2245_p3 = por %p2244_p2, %p2243_p1 }
   0xd   :  { %p2246_p4 = pnand %p2245_p3, %p2239_p0 }
   0xf   :  { %2249 = shalt.err (!%p2246_p4)
}
  0x10   :  { %s2434_s23 = smov 128   ;;  %s2435_s24 = smov 8  }
  0x11   :  { %59 = dma.hbm_to_vmem [thread:$0]  %s2979_s2, 1024, %s54_s19, [#allocation8], %s2434_s23, %s2434_s23, %s2435_s24  }
  0x12   :  { %s2258_s27 = scalar_lea.vmem %s80_s21, 2048  ;;  %p2263_p6 = scmp.lt.s32.totalorder %s80_s21, %s80_s21 }
  0x13   :  { %p2259_p5 = scmp.ne.s32.totalorder %s80_s21, %s2258_s27  ;;  %p2264_p7 = scmp.lt.s32.totalorder %s2258_s27, %s2258_s27 }
  0x15   :  { %p2265_p8 = por %p2264_p7, %p2263_p6 }
  0x17   :  { %p2266_p9 = pnand %p2265_p8, %p2259_p5 }
  0x19   :  { %2269 = shalt.err (!%p2266_p9)
}
  0x1a   :  { %85 = dma.hbm_to_vmem [thread:$0]  %s2982_s5, 2048, %s80_s21, [#allocation11], %s2434_s23, %s2434_s23, %s2435_s24  }
  0x1b   :  { %s2436_s30 = smov [#allocation13]   ;;  %s2437_s17 = smov [#allocation6]  }
  0x1c   :  { %s109_s16 = sshll.u32 %s2436_s30, 4  ;;  %s41_s18 = sshll.u32 %s2437_s17, 4  ;;  %s110_s16 = int_to_ptr.vmem [resolvable:$true] %s109_s16  ;;  %s42_s18 = int_to_ptr.vmem [resolvable:$true] %s41_s18 }
  0x1d   :  { %s2278_s2 = scalar_lea.vmem %s110_s16, 2048  ;;  %p2283_p11 = scmp.lt.s32.totalorder %s110_s16, %s110_s16 }
  0x1e   :  { %p2279_p10 = scmp.ne.s32.totalorder %s110_s16, %s2278_s2  ;;  %p2284_p12 = scmp.lt.s32.totalorder %s2278_s2, %s2278_s2 }
  0x20   :  { %p2285_p13 = por %p2284_p12, %p2283_p11 }
  0x22   :  { %p2286_p0 = pnand %p2285_p13, %p2279_p10 }
  0x24   :  { %2289 = shalt.err (!%p2286_p0)
}
  0x25   :  { %115 = dma.hbm_to_vmem [thread:$0]  %s2987_s10, 2048, %s110_s16, [#allocation14], %s2434_s23, %s2434_s23, %s2435_s24  }
  0x26   :  { %s2438_s5 = smov [#allocation2]   ;;  %s2306_s25 = scalar_lea.vmem %s42_s18, 1024 }
  0x27   :  { %35 = dma.hbm_to_smem %s2977_s0, 16, %s2438_s5, [#allocation5]  }
  0x28   :  { %p2307_p1 = scmp.ne.s32.totalorder %s42_s18, %s2306_s25  ;;  %p2311_p2 = scmp.lt.s32.totalorder %s42_s18, %s42_s18 }
  0x29   :  { %p2312_p3 = scmp.lt.s32.totalorder %s2306_s25, %s2306_s25 }
  0x2b   :  { %p2313_p4 = por %p2312_p3, %p2311_p2 }
  0x2d   :  { %p2314_p5 = pnand %p2313_p4, %p2307_p1 }
  0x2f   :  { %2317 = shalt.err (!%p2314_p5)
}
  0x30   :  { %47 = dma.hbm_to_vmem [thread:$0]  %s2978_s1, 1024, %s42_s18, [#allocation3], %s2434_s23, %s2434_s23, %s2435_s24  }
  0x31   :  { %s2439_s10 = smov [#allocation9]   ;;  %s2440_s29 = smov [#allocation12]  }
  0x32   :  { %s65_s28 = sshll.u32 %s2439_s10, 4  ;;  %s95_s0 = sshll.u32 %s2440_s29, 4  ;;  %s66_s28 = int_to_ptr.vmem [resolvable:$true] %s65_s28  ;;  %s96_s0 = int_to_ptr.vmem [resolvable:$true] %s95_s0 }
  0x33   :  { %s2326_s30 = scalar_lea.vmem %s66_s28, 2048  ;;  %p2331_p7 = scmp.lt.s32.totalorder %s66_s28, %s66_s28 }
  0x34   :  { %p2327_p6 = scmp.ne.s32.totalorder %s66_s28, %s2326_s30  ;;  %p2332_p8 = scmp.lt.s32.totalorder %s2326_s30, %s2326_s30 }
  0x36   :  { %p2333_p9 = por %p2332_p8, %p2331_p7 }
  0x38   :  { %p2334_p10 = pnand %p2333_p9, %p2327_p6 }
  0x3a   :  { %2337 = shalt.err (!%p2334_p10)
}
  0x3b   :  { %71 = dma.hbm_to_vmem [thread:$0]  %s2980_s3, 2048, %s66_s28, [#allocation8], %s2434_s23, %s2434_s23, %s2435_s24  }
  0x3c   :  { %s2346_s1 = scalar_lea.vmem %s96_s0, 2048  ;;  %p2351_p12 = scmp.lt.s32.totalorder %s96_s0, %s96_s0 }
  0x3d   :  { %p2347_p11 = scmp.ne.s32.totalorder %s96_s0, %s2346_s1  ;;  %p2352_p13 = scmp.lt.s32.totalorder %s2346_s1, %s2346_s1 }
  0x3f   :  { %p2353_p0 = por %p2352_p13, %p2351_p12 }
  0x41   :  { %p2354_p1 = pnand %p2353_p0, %p2347_p11 }
  0x43   :  { %2357 = shalt.err (!%p2354_p1)
}
  0x44   :  { %101 = dma.hbm_to_vmem [thread:$0]  %s2985_s8, 2048, %s96_s0, [#allocation11], %s2434_s23, %s2434_s23, %s2435_s24  }
  0x45   :  { %s2441_s19 = smov [#allocation15]  }
  0x46   :  { %s123_s20 = sshll.u32 %s2441_s19, 4  ;;  %s124_s20 = int_to_ptr.vmem [resolvable:$true] %s123_s20 }
  0x47   :  { %s2366_s5 = scalar_lea.vmem %s124_s20, 2048  ;;  %p2371_p3 = scmp.lt.s32.totalorder %s124_s20, %s124_s20 }
  0x48   :  { %p2367_p2 = scmp.ne.s32.totalorder %s124_s20, %s2366_s5  ;;  %p2372_p4 = scmp.lt.s32.totalorder %s2366_s5, %s2366_s5 }
  0x4a   :  { %p2373_p5 = por %p2372_p4, %p2371_p3 }
  0x4c   :  { %p2374_p6 = pnand %p2373_p5, %p2367_p2 }
  0x4e   :  { %2377 = shalt.err (!%p2374_p6)
}
  0x4f   :  { %129 = dma.hbm_to_vmem [thread:$0]  %s2989_s12, 2048, %s124_s20, [#allocation14], %s2434_s23, %s2434_s23, %s2435_s24  }
  0x50   :  { %2418 = dma.done.wait [#allocation5], 16  }
  0x51   :  { %2419 = vsyncadd [#allocation5], 4294967280 }
  0x52   :  { %2420 = dma.done.wait [#allocation3], 1024  }
  0x53   :  { %2421 = vsyncadd [#allocation3], 4294966272 }
  0x54   :  { %2422 = dma.done.wait [#allocation8], 3072  }
  0x55   :  { %2423 = vsyncadd [#allocation8], 4294964224 }
  0x56   :  { %2424 = dma.done.wait [#allocation11], 4096  }
  0x57   :  { %2425 = vsyncadd [#allocation11], 4294963200 }
  0x58   :  { %2426 = dma.done.wait [#allocation14], 4096  }
  0x59   :  { %2427 = vsyncadd [#allocation14], 4294963200 }
  0x5a   :  { %156 = sfence }
  0x5b   :  { %v196_v0 = vld [vmem:[#allocation9 + $0x78] sm:$0xff]  ;;  %v195_v1 = vld [vmem:[#allocation9 + $0x70] sm:$0xff]  ;;  %v194_v2 = vld [vmem:[#allocation9 + $0x68] sm:$0xff]  ;;  %vm445_vm0 = vcmask 523264   ;;  %s1595_s25 = sld [smem:[#allocation2 + $0x4]] }
  0x5c   :  { %1806 = vmatprep.subr.mxu0 %v196_v0  ;;  %v193_v3 = vld [vmem:[#allocation9 + $0x60] sm:$0xff]  ;;  %v192_v5 = vld [vmem:[#allocation9 + $0x58] sm:$0xff]  ;;  %v191_v6 = vld [vmem:[#allocation9 + $0x50] sm:$0xff]  ;;  %s1592_s26 = sld [smem:[#allocation2 + $0x1]] }
  0x5d   :  { %1807 = vmatpush3.msra.mxu0 %v196_v0  ;;  %v165_v4 = vld [vmem:[#allocation6] sm:$0xff]  ;;  %v332_v7 = vld [vmem:[#allocation10 + $0x78] sm:$0xff]  ;;  %v331_v8 = vld [vmem:[#allocation10 + $0x70] sm:$0xff]  ;;  %s1596_s27 = sld [smem:[#allocation2 + $0x5]] }
  0x5e   :  { %1808 = vmatprep.subr.mxu0 %v195_v1  ;;  %1838 = vmatprep.mubr.f32.mxu0 %v165_v4  ;;  %v190_v9 = vld [vmem:[#allocation9 + $0x48] sm:$0xff]  ;;  %v189_v11 = vld [vmem:[#allocation9 + $0x40] sm:$0xff]  ;;  %v188_v13 = vld [vmem:[#allocation9 + $0x38] sm:$0xff]  ;;  %s1593_s10 = sld [smem:[#allocation2 + $0x2]] }
  0x5f   :  { %1809 = vmatpush3.msra.mxu0 %v195_v1  ;;  %1850 = vmatprep.subr.mxu1 %v332_v7  ;;  %v330_v10 = vld [vmem:[#allocation10 + $0x68] sm:$0xff]  ;;  %v329_v12 = vld [vmem:[#allocation10 + $0x60] sm:$0xff]  ;;  %v328_v14 = vld [vmem:[#allocation10 + $0x58] sm:$0xff]  ;;  %s1597_s28 = sld [smem:[#allocation2 + $0x6]] }
  0x60   :  { %1810 = vmatprep.subr.mxu0 %v194_v2  ;;  %1851 = vmatpush3.msra.mxu1 %v332_v7  ;;  %v187_v15 = vld [vmem:[#allocation9 + $0x30] sm:$0xff]  ;;  %v186_v17 = vld [vmem:[#allocation9 + $0x28] sm:$0xff]  ;;  %v185_v19 = vld [vmem:[#allocation9 + $0x20] sm:$0xff]  ;;  %s1594_s29 = sld [smem:[#allocation2 + $0x3]] }
  0x61   :  { %1811 = vmatpush3.msra.mxu0 %v194_v2  ;;  %1852 = vmatprep.subr.mxu1 %v331_v8  ;;  %v327_v16 = vld [vmem:[#allocation10 + $0x50] sm:$0xff]  ;;  %v326_v18 = vld [vmem:[#allocation10 + $0x48] sm:$0xff]  ;;  %v325_v20 = vld [vmem:[#allocation10 + $0x40] sm:$0xff]  ;;  %s1598_s0 = sld [smem:[#allocation2 + $0x7]] }
  0x62   :  { %1812 = vmatprep.subr.mxu0 %v193_v3  ;;  %1853 = vmatpush3.msra.mxu1 %v331_v8  ;;  %v184_v21 = vld [vmem:[#allocation9 + $0x18] sm:$0xff]  ;;  %v183_v23 = vld [vmem:[#allocation9 + $0x10] sm:$0xff]  ;;  %v182_v25 = vld [vmem:[#allocation9 + $0x8] sm:$0xff] }
  0x63   :  { %1813 = vmatpush3.msra.mxu0 %v193_v3  ;;  %1854 = vmatprep.subr.mxu1 %v330_v10  ;;  %v324_v22 = vld [vmem:[#allocation10 + $0x38] sm:$0xff]  ;;  %v323_v24 = vld [vmem:[#allocation10 + $0x30] sm:$0xff]  ;;  %v322_v26 = vld [vmem:[#allocation10 + $0x28] sm:$0xff] }
  0x64   :  { %1814 = vmatprep.subr.mxu0 %v192_v5  ;;  %1855 = vmatpush3.msra.mxu1 %v330_v10  ;;  %v181_v27 = vld [vmem:[#allocation9] sm:$0xff]  ;;  %v166_v29 = vld [vmem:[#allocation6 + $0x8] sm:$0xff]  ;;  %v167_v30 = vld [vmem:[#allocation6 + $0x10] sm:$0xff] }
  0x65   :  { %1815 = vmatpush3.msra.mxu0 %v192_v5  ;;  %1856 = vmatprep.subr.mxu1 %v329_v12  ;;  %v321_v28 = vld [vmem:[#allocation10 + $0x20] sm:$0xff]  ;;  %v168_v31 = vld [vmem:[#allocation6 + $0x18] sm:$0xff]  ;;  %v170_v33 = vld [vmem:[#allocation6 + $0x28] sm:$0xff] }
  0x66   :  { %1816 = vmatprep.subr.mxu0 %v191_v6  ;;  %1857 = vmatpush3.msra.mxu1 %v329_v12  ;;  %v169_v32 = vld [vmem:[#allocation6 + $0x20] sm:$0xff]  ;;  %v171_v34 = vld [vmem:[#allocation6 + $0x30] sm:$0xff]  ;;  %v172_v35 = vld [vmem:[#allocation6 + $0x38] sm:$0xff] }
  0x67   :  { %1817 = vmatpush3.msra.mxu0 %v191_v6  ;;  %1858 = vmatprep.subr.mxu1 %v328_v14  ;;  %v320_v36 = vld [vmem:[#allocation10 + $0x18] sm:$0xff]  ;;  %v319_v37 = vld [vmem:[#allocation10 + $0x10] sm:$0xff]  ;;  %v318_v38 = vld [vmem:[#allocation10 + $0x8] sm:$0xff] }
  0x68   :  { %1818 = vmatprep.subr.mxu0 %v190_v9  ;;  %1859 = vmatpush3.msra.mxu1 %v328_v14  ;;  %v317_v39 = vld [vmem:[#allocation10] sm:$0xff] }
  0x69   :  { %1819 = vmatpush3.msra.mxu0 %v190_v9  ;;  %1860 = vmatprep.subr.mxu1 %v327_v16  ;;  %v1599_v40 = vld [vmem:[%s2981_s4] ss:$0 sm:$0xff] }
  0x6a   :  { %1820 = vmatprep.subr.mxu0 %v189_v11  ;;  %1861 = vmatpush3.msra.mxu1 %v327_v16  ;;  %v173_v1 = vld [vmem:[#allocation7] sm:$0xff] }
  0x6b   :  { %1821 = vmatpush3.msra.mxu0 %v189_v11  ;;  %1862 = vmatprep.subr.mxu1 %v326_v18  ;;  %v1600_v8 = vld [vmem:[%s2983_s6] ss:$0 sm:$0xff]  ;;  %s157_s6 = sld [smem:[#allocation2]] }
  0x6c   :  { %1822 = vmatprep.subr.mxu0 %v188_v13  ;;  %1863 = vmatpush3.msra.mxu1 %v326_v18 }
  0x6d   :  { %1823 = vmatpush3.msra.mxu0 %v188_v13  ;;  %1864 = vmatprep.subr.mxu1 %v325_v20 }
  0x6e   :  { %1824 = vmatprep.subr.mxu0 %v187_v15  ;;  %1865 = vmatpush3.msra.mxu1 %v325_v20  ;;  %v2610_v20 = vld [vmem:[#allocation7 + $0x10] sm:$0xff] }
  0x6f   :  { %1825 = vmatpush3.msra.mxu0 %v187_v15  ;;  %1866 = vmatprep.subr.mxu1 %v324_v22 }
  0x70   :  { %1826 = vmatprep.subr.mxu0 %v186_v17  ;;  %1867 = vmatpush3.msra.mxu1 %v324_v22  ;;  %v2619_v22 = vld [vmem:[#allocation7 + $0x20] sm:$0xff] }
  0x71   :  { %1827 = vmatpush3.msra.mxu0 %v186_v17  ;;  %1868 = vmatprep.subr.mxu1 %v323_v24 }
  0x72   :  { %1828 = vmatprep.subr.mxu0 %v185_v19  ;;  %1869 = vmatpush3.msra.mxu1 %v323_v24  ;;  %v2627_v24 = vld [vmem:[#allocation7 + $0x30] sm:$0xff] }
  0x73   :  { %1829 = vmatpush3.msra.mxu0 %v185_v19  ;;  %1870 = vmatprep.subr.mxu1 %v322_v26  ;;  %v2607_v19 = vld [vmem:[#allocation7 + $0x8] sm:$0xff] }
  0x74   :  { %1830 = vmatprep.subr.mxu0 %v184_v21  ;;  %1871 = vmatpush3.msra.mxu1 %v322_v26 }
  0x75   :  { %1831 = vmatpush3.msra.mxu0 %v184_v21  ;;  %1872 = vmatprep.subr.mxu1 %v321_v28  ;;  %v2617_v21 = vld [vmem:[#allocation7 + $0x18] sm:$0xff] }
  0x76   :  { %1832 = vmatprep.subr.mxu0 %v183_v23  ;;  %1873 = vmatpush3.msra.mxu1 %v321_v28 }
  0x77   :  { %1833 = vmatpush3.msra.mxu0 %v183_v23  ;;  %1874 = vmatprep.subr.mxu1 %v320_v36  ;;  %v2625_v23 = vld [vmem:[#allocation7 + $0x28] sm:$0xff] }
  0x78   :  { %1834 = vmatprep.subr.mxu0 %v182_v25  ;;  %1875 = vmatpush3.msra.mxu1 %v320_v36  ;;  %v944_v36 = vld [vmem:[#allocation12 + $0x68] sm:$0xff] }
  0x79   :  { %1835 = vmatpush3.msra.mxu0 %v182_v25  ;;  %1876 = vmatprep.subr.mxu1 %v319_v37  ;;  %v2633_v25 = vld [vmem:[#allocation7 + $0x38] sm:$0xff] }
  0x7a   :  { %1836 = vmatprep.subr.mxu0 %v181_v27  ;;  %1877 = vmatpush3.msra.mxu1 %v319_v37  ;;  %v943_v37 = vld [vmem:[#allocation12 + $0x60] sm:$0xff] }
  0x7b   :  { %1837 = vmatpush3.msra.mxu0 %v181_v27  ;;  %1878 = vmatprep.subr.mxu1 %v318_v38 }
  0x7c   :  { %1839 = vmatmul.mubr.f32.vlgmr.msra.gmra.mxu0 %v166_v29  ;;  %1879 = vmatpush3.msra.mxu1 %v318_v38  ;;  %v942_v38 = vld [vmem:[#allocation12 + $0x58] sm:$0xff] }
  0x7d   :  { %1841 = vmatprep.mubr.f32.mxu0 %v167_v30  ;;  %1880 = vmatprep.subr.mxu1 %v317_v39 }
  0x7e   :  { %1881 = vmatpush3.msra.mxu1 %v317_v39  ;;  %v941_v39 = vld [vmem:[#allocation12 + $0x50] sm:$0xff] }
  0x80   :  { %1842 = vmatmul.mubr.f32.gmra.mxu0 %v168_v31 }
  0x81   :  { %1844 = vmatprep.mubr.f32.mxu0 %v169_v32 }
  0x84   :  { %1845 = vmatmul.mubr.f32.gmra.mxu0 %v170_v33 }
  0x85   :  { %1847 = vmatprep.mubr.f32.mxu0 %v171_v34  ;;  %v946_v34 = vld [vmem:[#allocation12 + $0x78] sm:$0xff] }
  0x88   :  { %1848 = vmatmul.mubr.f32.gmra.mxu0 %v172_v35  ;;  %v945_v35 = vld [vmem:[#allocation12 + $0x70] sm:$0xff] }
  0x89   :  { %1910 = vmatprep.mubr.msk.f32.mxu0 %vm445_vm0, %v173_v1 }
 0x13c   :  { %v1840_v41 = vpop.f32.mrf.mxu0 }
 0x13d   :  { %v276_v42 = vadd.f32 %v1840_v41, %v1599_v40  ;;  %v939_v41 = vld [vmem:[#allocation12 + $0x40] sm:$0xff] }
 0x13e   :  { %v270_v43 = vpop.f32.mrf.mxu0 }
 0x13f   :  { %v271_v44 = vadd.f32 %v1599_v40, %v270_v43  ;;  %v310_v47 = vmax.f32 %v276_v42, 0.0  ;;  %v938_v42 = vld [vmem:[#allocation12 + $0x38] sm:$0xff]  ;;  %v937_v43 = vld [vmem:[#allocation12 + $0x30] sm:$0xff] }
 0x140   :  { %v1843_v45 = vpop.f32.mrf.mxu0 }
 0x141   :  { %v309_v46 = vmax.f32 %v271_v44, 0.0  ;;  %v286_v48 = vadd.f32 %v1843_v45, %v1599_v40  ;;  %v936_v44 = vld [vmem:[#allocation12 + $0x28] sm:$0xff]  ;;  %v2684_v45 = vstv %s157_s6 }
 0x142   :  { %v280_v49 = vpop.f32.mrf.mxu0 }
 0x143   :  { %v281_v50 = vadd.f32 %v1599_v40, %v280_v49  ;;  %1882 = vmatprep.mubr.f32.mxu1 %v309_v46  ;;  %v312_v53 = vmax.f32 %v286_v48, 0.0  ;;  %v2686_v46 = vstv %s1595_s25  ;;  %v2690_v48 = vstv %s1596_s27 }
 0x144   :  { %v1846_v51 = vpop.f32.mrf.mxu0  ;;  %1883 = vmatmul.mubr.f32.vlgmr.msra.gmra.mxu1 %v310_v47  ;;  %v2688_v47 = vstv %s1592_s26 }
 0x145   :  { %v311_v52 = vmax.f32 %v281_v50, 0.0  ;;  %v296_v54 = vadd.f32 %v1846_v51, %v1599_v40 }
 0x146   :  { %v290_v55 = vpop.f32.mrf.mxu0 }
 0x147   :  { %v291_v56 = vadd.f32 %v1599_v40, %v290_v55  ;;  %1885 = vmatprep.mubr.f32.mxu1 %v311_v52  ;;  %v314_v59 = vmax.f32 %v296_v54, 0.0 }
 0x148   :  { %v1849_v57 = vpop.f32.mrf.mxu0  ;;  %1886 = vmatmul.mubr.f32.gmra.mxu1 %v312_v53 }
 0x149   :  { %v313_v58 = vmax.f32 %v291_v56, 0.0  ;;  %v306_v60 = vadd.f32 %v1849_v57, %v1599_v40 }
 0x14a   :  { %v300_v61 = vpop.f32.mrf.mxu0 }
 0x14b   :  { %v301_v62 = vadd.f32 %v1599_v40, %v300_v61  ;;  %1888 = vmatprep.mubr.f32.mxu1 %v313_v58  ;;  %v316_v0 = vmax.f32 %v306_v60, 0.0  ;;  %v940_v40 = vld [vmem:[#allocation12 + $0x48] sm:$0xff]  ;;  %v2714_v60 = vstv %s1597_s28 }
 0x14c   :  { %1889 = vmatmul.mubr.f32.gmra.mxu1 %v314_v59  ;;  %v2712_v59 = vstv %s1593_s10 }
 0x14d   :  { %v315_v63 = vmax.f32 %v301_v62, 0.0 }
 0x14f   :  { %1891 = vmatprep.mubr.f32.mxu1 %v315_v63 }
 0x150   :  { %1892 = vmatmul.mubr.f32.gmra.mxu1 %v316_v0 }
 0x151   :  { %1938 = vmatprep.mubr.msk.f32.mxu1 %vm445_vm0, %v173_v1 }
 0x204   :  { %v1884_v2 = vpop.f32.mrf.mxu1 }
 0x205   :  { %v2599_v17 = vadd.f32 %v1884_v2, %v1600_v8 }
 0x206   :  { %v406_v3 = vpop.f32.mrf.mxu1 }
 0x207   :  { %v2603_v18 = vadd.f32 %v1600_v8, %v406_v3  ;;  %v787_v49 = vmul.f32 %v2684_v45, %v2599_v17  ;;  %v860_v50 = vmul.f32 %v2686_v46, %v2599_v17 }
 0x208   :  { %v1887_v4 = vpop.f32.mrf.mxu1 }
 0x209   :  { %v2591_v15 = vadd.f32 %v1887_v4, %v1600_v8  ;;  %v786_v51 = vmul.f32 %v2684_v45, %v2603_v18  ;;  %v859_v52 = vmul.f32 %v2686_v46, %v2603_v18 }
 0x20a   :  { %v416_v5 = vpop.f32.mrf.mxu1 }
 0x20b   :  { %v2595_v16 = vadd.f32 %v1600_v8, %v416_v5  ;;  %v789_v55 = vmul.f32 %v2684_v45, %v2591_v15  ;;  %v862_v56 = vmul.f32 %v2686_v46, %v2591_v15 }
 0x20c   :  { %v1890_v6 = vpop.f32.mrf.mxu1 }
 0x20d   :  { %v2583_v13 = vadd.f32 %v1890_v6, %v1600_v8  ;;  %v788_v61 = vmul.f32 %v2684_v45, %v2595_v16  ;;  %v861_v62 = vmul.f32 %v2686_v46, %v2595_v16 }
 0x20e   :  { %v426_v7 = vpop.f32.mrf.mxu1 }
 0x20f   :  { %v2587_v14 = vadd.f32 %v1600_v8, %v426_v7  ;;  %v791_v63 = vmul.f32 %v2684_v45, %v2583_v13  ;;  %v864_v0 = vmul.f32 %v2686_v46, %v2583_v13 }
 0x210   :  { %v1893_v9 = vpop.f32.mrf.mxu1 }
 0x211   :  { %v2577_v10 = vadd.f32 %v1893_v9, %v1600_v8  ;;  %v790_v4 = vmul.f32 %v2684_v45, %v2587_v14  ;;  %v863_v5 = vmul.f32 %v2686_v46, %v2587_v14 }
 0x212   :  { %v436_v11 = vpop.f32.mrf.mxu1 }
 0x213   :  { %v2579_v12 = vadd.f32 %v1600_v8, %v436_v11  ;;  %1894 = vmatprep.subr.mxu0 %v2577_v10 }
 0x214   :  { %1895 = vmatpush3.msra.mxu0 %v2577_v10 }
 0x215   :  { %1896 = vmatprep.subr.mxu0 %v2579_v12 }
 0x216   :  { %1897 = vmatpush3.msra.mxu0 %v2579_v12 }
 0x217   :  { %1898 = vmatprep.subr.mxu0 %v2583_v13 }
 0x218   :  { %1899 = vmatpush3.msra.mxu0 %v2583_v13 }
 0x219   :  { %1900 = vmatprep.subr.mxu0 %v2587_v14 }
 0x21a   :  { %1901 = vmatpush3.msra.mxu0 %v2587_v14 }
 0x21b   :  { %1902 = vmatprep.subr.mxu0 %v2591_v15 }
 0x21c   :  { %1903 = vmatpush3.msra.mxu0 %v2591_v15 }
 0x21d   :  { %1904 = vmatprep.subr.mxu0 %v2595_v16 }
 0x21e   :  { %1905 = vmatpush3.msra.mxu0 %v2595_v16 }
 0x21f   :  { %1906 = vmatprep.subr.mxu0 %v2599_v17 }
 0x220   :  { %1907 = vmatpush3.msra.mxu0 %v2599_v17 }
 0x221   :  { %1908 = vmatprep.subr.mxu0 %v2603_v18 }
 0x222   :  { %1909 = vmatpush3.msra.mxu0 %v2603_v18 }
 0x223   :  { %1911 = vmatmul.mubr.msk.f32.vlgmr.msra.gmra.mxu0 %vm445_vm0, %v2607_v19 }
 0x224   :  { %1913 = vmatprep.mubr.msk.f32.mxu0 %vm445_vm0, %v2610_v20 }
 0x227   :  { %1914 = vmatmul.mubr.msk.f32.gmra.mxu0 %vm445_vm0, %v2617_v21 }
 0x228   :  { %1916 = vmatprep.mubr.msk.f32.mxu0 %vm445_vm0, %v2619_v22 }
 0x22b   :  { %1917 = vmatmul.mubr.msk.f32.gmra.mxu0 %vm445_vm0, %v2625_v23 }
 0x22c   :  { %1919 = vmatprep.mubr.msk.f32.mxu0 %vm445_vm0, %v2627_v24 }
 0x22f   :  { %1920 = vmatmul.mubr.msk.f32.gmra.mxu0 %vm445_vm0, %v2633_v25 }
 0x230   :  { %1966 = vmatprep.mubr.msk.f32.mxu0 %vm445_vm0, %v173_v1 }
 0x2e3   :  { %v2638_v26 = vpop.f32.mrf.mxu0 }
 0x2e4   :  { %v796_v53 = vmul.f32 %v2638_v26, %v2688_v47  ;;  %v869_v54 = vmul.f32 %v2638_v26, %v2690_v48 }
 0x2e5   :  { %v2640_v27 = vpop.f32.mrf.mxu0 }
 0x2e6   :  { %v795_v57 = vmul.f32 %v2688_v47, %v2640_v27  ;;  %v868_v58 = vmul.f32 %v2690_v48, %v2640_v27  ;;  %v804_v8 = vadd.f32 %v796_v53, %v787_v49  ;;  %v877_v9 = vadd.f32 %v869_v54, %v860_v50 }
 0x2e7   :  { %v2642_v28 = vpop.f32.mrf.mxu0 }
 0x2e8   :  { %v798_v1 = vmul.f32 %v2642_v28, %v2688_v47  ;;  %v871_v2 = vmul.f32 %v2642_v28, %v2690_v48 }
 0x2e9   :  { %v2644_v29 = vpop.f32.mrf.mxu0 }
 0x2ea   :  { %v797_v11 = vmul.f32 %v2688_v47, %v2644_v29 }
 0x2eb   :  { %v2646_v30 = vpop.f32.mrf.mxu0 }
 0x2ec   :  { %v805_v54 = vadd.f32 %v797_v11, %v788_v61 }
 0x2ed   :  { %v2648_v31 = vpop.f32.mrf.mxu0 }
 0x2ef   :  { %v2650_v32 = vpop.f32.mrf.mxu0 }
 0x2f0   :  { %1922 = vmatprep.subr.mxu1 %v2650_v32 }
 0x2f1   :  { %v2653_v33 = vpop.f32.mrf.mxu0  ;;  %1923 = vmatpush3.msra.mxu1 %v2650_v32 }
 0x2f2   :  { %1924 = vmatprep.subr.mxu1 %v2653_v33 }
 0x2f3   :  { %1925 = vmatpush3.msra.mxu1 %v2653_v33 }
 0x2f4   :  { %1926 = vmatprep.subr.mxu1 %v2646_v30 }
 0x2f5   :  { %1927 = vmatpush3.msra.mxu1 %v2646_v30 }
 0x2f6   :  { %1928 = vmatprep.subr.mxu1 %v2648_v31 }
 0x2f7   :  { %1929 = vmatpush3.msra.mxu1 %v2648_v31 }
 0x2f8   :  { %1930 = vmatprep.subr.mxu1 %v2642_v28 }
 0x2f9   :  { %1931 = vmatpush3.msra.mxu1 %v2642_v28  ;;  %v803_v28 = vadd.f32 %v795_v57, %v786_v51  ;;  %v799_v51 = vmul.f32 %v2688_v47, %v2648_v31 }
 0x2fa   :  { %1932 = vmatprep.subr.mxu1 %v2644_v29 }
 0x2fb   :  { %1933 = vmatpush3.msra.mxu1 %v2644_v29 }
 0x2fc   :  { %1934 = vmatprep.subr.mxu1 %v2638_v26 }
 0x2fd   :  { %1935 = vmatpush3.msra.mxu1 %v2638_v26  ;;  %v870_v26 = vmul.f32 %v2690_v48, %v2644_v29  ;;  %v873_v29 = vmul.f32 %v2646_v30, %v2690_v48 }
 0x2fe   :  { %1936 = vmatprep.subr.mxu1 %v2640_v27 }
 0x2ff   :  { %1937 = vmatpush3.msra.mxu1 %v2640_v27 }
 0x300   :  { %1939 = vmatmul.mubr.msk.f32.vlgmr.msra.gmra.mxu1 %vm445_vm0, %v2607_v19  ;;  %1978 = vmatprep.subr.mxu1 %v946_v34 }
 0x301   :  { %1941 = vmatprep.mubr.msk.f32.mxu1 %vm445_vm0, %v2610_v20  ;;  %1979 = vmatpush3.msra.mxu1 %v946_v34  ;;  %v876_v34 = vadd.f32 %v868_v58, %v859_v52  ;;  %v872_v52 = vmul.f32 %v2690_v48, %v2648_v31  ;;  %v881_v31 = vadd.f32 %v873_v29, %v864_v0 }
 0x302   :  { %1980 = vmatprep.subr.mxu1 %v945_v35 }
 0x303   :  { %1981 = vmatpush3.msra.mxu1 %v945_v35 }
 0x304   :  { %1942 = vmatmul.mubr.msk.f32.gmra.mxu1 %vm445_vm0, %v2617_v21  ;;  %1982 = vmatprep.subr.mxu1 %v944_v36 }
 0x305   :  { %1944 = vmatprep.mubr.msk.f32.mxu1 %vm445_vm0, %v2619_v22  ;;  %1983 = vmatpush3.msra.mxu1 %v944_v36 }
 0x306   :  { %1984 = vmatprep.subr.mxu1 %v943_v37 }
 0x307   :  { %1985 = vmatpush3.msra.mxu1 %v943_v37 }
 0x308   :  { %1945 = vmatmul.mubr.msk.f32.gmra.mxu1 %vm445_vm0, %v2625_v23  ;;  %1986 = vmatprep.subr.mxu1 %v942_v38 }
 0x309   :  { %1947 = vmatprep.mubr.msk.f32.mxu1 %vm445_vm0, %v2627_v24  ;;  %1987 = vmatpush3.msra.mxu1 %v942_v38 }
 0x30a   :  { %1988 = vmatprep.subr.mxu1 %v941_v39 }
 0x30b   :  { %1989 = vmatpush3.msra.mxu1 %v941_v39  ;;  %v800_v39 = vmul.f32 %v2646_v30, %v2688_v47  ;;  %v878_v30 = vadd.f32 %v870_v26, %v861_v62  ;;  %v807_v26 = vadd.f32 %v799_v51, %v790_v4 }
 0x30c   :  { %1948 = vmatmul.mubr.msk.f32.gmra.mxu1 %vm445_vm0, %v2633_v25  ;;  %1990 = vmatprep.subr.mxu1 %v940_v40 }
 0x30d   :  { %1991 = vmatpush3.msra.mxu1 %v940_v40 }
 0x30e   :  { %1992 = vmatprep.subr.mxu1 %v939_v41 }
 0x30f   :  { %1993 = vmatpush3.msra.mxu1 %v939_v41  ;;  %v806_v41 = vadd.f32 %v798_v1, %v789_v55  ;;  %v802_v1 = vmul.f32 %v2650_v32, %v2688_v47 }
 0x310   :  { %1994 = vmatprep.subr.mxu1 %v938_v42 }
 0x311   :  { %1995 = vmatpush3.msra.mxu1 %v938_v42  ;;  %v879_v42 = vadd.f32 %v871_v2, %v862_v56  ;;  %v875_v2 = vmul.f32 %v2650_v32, %v2690_v48  ;;  %v866_v32 = vmul.f32 %v2686_v46, %v2577_v10 }
 0x312   :  { %1996 = vmatprep.subr.mxu1 %v937_v43 }
 0x313   :  { %1997 = vmatpush3.msra.mxu1 %v937_v43 }
 0x314   :  { %1998 = vmatprep.subr.mxu1 %v936_v44 }
 0x315   :  { %1999 = vmatpush3.msra.mxu1 %v936_v44 }
 0x3c0   :  { %v2728_v3 = vpop.f32.mrf.mxu1 }
 0x3c1   :  { %v813_v6 = vmul.f32 %v2728_v3, %v2712_v59  ;;  %v886_v7 = vmul.f32 %v2728_v3, %v2714_v60 }
 0x3c2   :  { %v2742_v27 = vpop.f32.mrf.mxu1 }
 0x3c3   :  { %v812_v35 = vmul.f32 %v2712_v59, %v2742_v27  ;;  %v885_v36 = vmul.f32 %v2714_v60, %v2742_v27  ;;  %v2748_v37 = vadd.f32 %v813_v6, %v804_v8  ;;  %v2750_v38 = vadd.f32 %v886_v7, %v877_v9 }
 0x3c4   :  { %v1943_v40 = vpop.f32.mrf.mxu1  ;;  %v808_v7 = vadd.f32 %v800_v39, %v791_v63 }
 0x3c5   :  { %v815_v43 = vmul.f32 %v1943_v40, %v2712_v59  ;;  %v888_v44 = vmul.f32 %v1943_v40, %v2714_v60  ;;  %v2758_v49 = vadd.f32 %v812_v35, %v803_v28  ;;  %v2760_v50 = vadd.f32 %v885_v36, %v876_v34 }
 0x3c6   :  { %v651_v53 = vpop.f32.mrf.mxu1  ;;  %v880_v28 = vadd.f32 %v872_v52, %v863_v5  ;;  %v793_v34 = vmul.f32 %v2684_v45, %v2577_v10 }
 0x3c7   :  { %v814_v55 = vmul.f32 %v2712_v59, %v651_v53  ;;  %v887_v56 = vmul.f32 %v2714_v60, %v651_v53  ;;  %v2768_v57 = vadd.f32 %v815_v43, %v806_v41  ;;  %v2770_v58 = vadd.f32 %v888_v44, %v879_v42 }
 0x3c8   :  { %v1946_v6 = vpop.f32.mrf.mxu1  ;;  %v810_v29 = vadd.f32 %v802_v1, %v793_v34  ;;  %v883_v41 = vadd.f32 %v875_v2, %v866_v32  ;;  %v935_v1 = vld [vmem:[#allocation12 + $0x20] sm:$0xff]  ;;  %v934_v2 = vld [vmem:[#allocation12 + $0x18] sm:$0xff] }
 0x3c9   :  { %v817_v61 = vmul.f32 %v1946_v6, %v2712_v59  ;;  %v890_v62 = vmul.f32 %v1946_v6, %v2714_v60  ;;  %v2778_v8 = vadd.f32 %v814_v55, %v805_v54  ;;  %v2780_v9 = vadd.f32 %v887_v56, %v878_v30  ;;  %v1130_v54 = vld [vmem:[#allocation13 + $0x78] sm:$0xff]  ;;  %v1129_v30 = vld [vmem:[#allocation13 + $0x70] sm:$0xff]  ;;  %v1116_v56 = vld [vmem:[#allocation13 + $0x8] sm:$0xff]  ;;  %2000 = vmatprep.subr.mxu1 %v935_v1 }
 0x3ca   :  { %v661_v11 = vpop.f32.mrf.mxu1  ;;  %v1118_v55 = vld [vmem:[#allocation13 + $0x18] sm:$0xff]  ;;  %2001 = vmatpush3.msra.mxu1 %v935_v1 }
 0x3cb   :  { %v816_v63 = vmul.f32 %v2712_v59, %v661_v11  ;;  %v889_v0 = vmul.f32 %v2714_v60, %v661_v11  ;;  %v2788_v35 = vadd.f32 %v817_v61, %v808_v7  ;;  %v2790_v36 = vadd.f32 %v890_v62, %v881_v31  ;;  %2002 = vmatprep.subr.mxu1 %v934_v2  ;;  %v1625_v62 = vld [vmem:[%s2984_s7] ss:$0 sm:$0xff] }
 0x3cc   :  { %v1949_v39 = vpop.f32.mrf.mxu1  ;;  %2003 = vmatpush3.msra.mxu1 %v934_v2 }
 0x3cd   :  { %v819_v4 = vmul.f32 %v1949_v39, %v2712_v59  ;;  %v892_v5 = vmul.f32 %v1949_v39, %v2714_v60  ;;  %1950 = vmatprep.subr.mxu0 %v1949_v39  ;;  %v2794_v42 = vadd.f32 %v816_v63, %v807_v26  ;;  %v2796_v43 = vadd.f32 %v889_v0, %v880_v28 }
 0x3ce   :  { %v2798_v44 = vpop.f32.mrf.mxu1  ;;  %1951 = vmatpush3.msra.mxu0 %v1949_v39  ;;  %v801_v63 = vmul.f32 %v2688_v47, %v2653_v33 }
 0x3cf   :  { %1952 = vmatprep.subr.mxu0 %v2798_v44  ;;  %v2801_v51 = vadd.f32 %v819_v4, %v810_v29  ;;  %v2803_v52 = vadd.f32 %v892_v5, %v883_v41  ;;  %v818_v5 = vmul.f32 %v2712_v59, %v2798_v44 }
 0x3d0   :  { %1953 = vmatpush3.msra.mxu0 %v2798_v44 }
 0x3d1   :  { %1954 = vmatprep.subr.mxu0 %v1946_v6 }
 0x3d2   :  { %1955 = vmatpush3.msra.mxu0 %v1946_v6  ;;  %v933_v6 = vld [vmem:[#allocation12 + $0x10] sm:$0xff] }
 0x3d3   :  { %1956 = vmatprep.subr.mxu0 %v661_v11  ;;  %2004 = vmatprep.subr.mxu1 %v933_v6 }
 0x3d4   :  { %1957 = vmatpush3.msra.mxu0 %v661_v11  ;;  %2005 = vmatpush3.msra.mxu1 %v933_v6 }
 0x3d5   :  { %1958 = vmatprep.subr.mxu0 %v1943_v40 }
 0x3d6   :  { %1959 = vmatpush3.msra.mxu0 %v1943_v40  ;;  %v1128_v40 = vld [vmem:[#allocation13 + $0x68] sm:$0xff] }
 0x3d7   :  { %1960 = vmatprep.subr.mxu0 %v651_v53 }
 0x3d8   :  { %1961 = vmatpush3.msra.mxu0 %v651_v53  ;;  %v1127_v53 = vld [vmem:[#allocation13 + $0x60] sm:$0xff] }
 0x3d9   :  { %1962 = vmatprep.subr.mxu0 %v2728_v3 }
 0x3da   :  { %1963 = vmatpush3.msra.mxu0 %v2728_v3  ;;  %v1126_v3 = vld [vmem:[#allocation13 + $0x58] sm:$0xff] }
 0x3db   :  { %1964 = vmatprep.subr.mxu0 %v2742_v27 }
 0x3dc   :  { %1965 = vmatpush3.msra.mxu0 %v2742_v27  ;;  %v1120_v27 = vld [vmem:[#allocation13 + $0x28] sm:$0xff] }
 0x3dd   :  { %1967 = vmatmul.mubr.msk.f32.vlgmr.msra.gmra.mxu0 %vm445_vm0, %v2607_v19  ;;  %2034 = vmatprep.subr.mxu0 %v1130_v54  ;;  %v1125_v19 = vld [vmem:[#allocation13 + $0x50] sm:$0xff] }
 0x3de   :  { %2035 = vmatpush3.msra.mxu0 %v1130_v54  ;;  %1969 = vmatprep.mubr.msk.f32.mxu0 %vm445_vm0, %v2610_v20  ;;  %v1124_v20 = vld [vmem:[#allocation13 + $0x48] sm:$0xff]  ;;  %v901_v54 = vstv %s1598_s0 }
 0x3df   :  { %2036 = vmatprep.subr.mxu0 %v1129_v30 }
 0x3e0   :  { %2037 = vmatpush3.msra.mxu0 %v1129_v30 }
 0x3e1   :  { %1970 = vmatmul.mubr.msk.f32.gmra.mxu0 %vm445_vm0, %v2617_v21  ;;  %2038 = vmatprep.subr.mxu0 %v1128_v40  ;;  %v1123_v21 = vld [vmem:[#allocation13 + $0x40] sm:$0xff] }
 0x3e2   :  { %2039 = vmatpush3.msra.mxu0 %v1128_v40  ;;  %1972 = vmatprep.mubr.msk.f32.mxu0 %vm445_vm0, %v2619_v22  ;;  %v1122_v22 = vld [vmem:[#allocation13 + $0x38] sm:$0xff] }
 0x3e3   :  { %2040 = vmatprep.subr.mxu0 %v1127_v53 }
 0x3e4   :  { %2041 = vmatpush3.msra.mxu0 %v1127_v53 }
 0x3e5   :  { %1973 = vmatmul.mubr.msk.f32.gmra.mxu0 %vm445_vm0, %v2625_v23  ;;  %2042 = vmatprep.subr.mxu0 %v1126_v3  ;;  %v1121_v23 = vld [vmem:[#allocation13 + $0x30] sm:$0xff] }
 0x3e6   :  { %2043 = vmatpush3.msra.mxu0 %v1126_v3  ;;  %1975 = vmatprep.mubr.msk.f32.mxu0 %vm445_vm0, %v2627_v24  ;;  %v1119_v24 = vld [vmem:[#allocation13 + $0x20] sm:$0xff] }
 0x3e7   :  { %2044 = vmatprep.subr.mxu0 %v1125_v19 }
 0x3e8   :  { %2045 = vmatpush3.msra.mxu0 %v1125_v19 }
 0x3e9   :  { %1976 = vmatmul.mubr.msk.f32.gmra.mxu0 %vm445_vm0, %v2633_v25  ;;  %2046 = vmatprep.subr.mxu0 %v1124_v20  ;;  %v1117_v25 = vld [vmem:[#allocation13 + $0x10] sm:$0xff] }
 0x3ea   :  { %2047 = vmatpush3.msra.mxu0 %v1124_v20  ;;  %2066 = vmatprep.mubr.f32.mxu0 %v2603_v18  ;;  %v1115_v18 = vld [vmem:[#allocation13] sm:$0xff] }
 0x3eb   :  { %2048 = vmatprep.subr.mxu0 %v1123_v21 }
 0x3ec   :  { %2049 = vmatpush3.msra.mxu0 %v1123_v21 }
 0x3ed   :  { %2050 = vmatprep.subr.mxu0 %v1122_v22 }
 0x3ee   :  { %2051 = vmatpush3.msra.mxu0 %v1122_v22 }
 0x3ef   :  { %2052 = vmatprep.subr.mxu0 %v1121_v23 }
 0x3f0   :  { %2053 = vmatpush3.msra.mxu0 %v1121_v23 }
 0x3f1   :  { %2054 = vmatprep.subr.mxu0 %v1120_v27 }
 0x3f2   :  { %2055 = vmatpush3.msra.mxu0 %v1120_v27 }
 0x3f3   :  { %2056 = vmatprep.subr.mxu0 %v1119_v24 }
 0x3f4   :  { %2057 = vmatpush3.msra.mxu0 %v1119_v24 }
 0x3f5   :  { %2058 = vmatprep.subr.mxu0 %v1118_v55 }
 0x3f6   :  { %2059 = vmatpush3.msra.mxu0 %v1118_v55 }
 0x3f7   :  { %2060 = vmatprep.subr.mxu0 %v1117_v25 }
 0x3f8   :  { %2061 = vmatpush3.msra.mxu0 %v1117_v25 }
 0x3f9   :  { %2062 = vmatprep.subr.mxu0 %v1116_v56 }
 0x3fa   :  { %2063 = vmatpush3.msra.mxu0 %v1116_v56 }
 0x3fb   :  { %2064 = vmatprep.subr.mxu0 %v1115_v18 }
 0x3fc   :  { %2065 = vmatpush3.msra.mxu0 %v1115_v18 }
 0x3fd   :  { %2067 = vmatmul.mubr.f32.vlgmr.msra.gmra.mxu0 %v2599_v17 }
 0x3fe   :  { %2069 = vmatprep.mubr.f32.mxu0 %v2595_v16  ;;  %v932_v16 = vld [vmem:[#allocation12 + $0x8] sm:$0xff] }
 0x3ff   :  { %2006 = vmatprep.subr.mxu1 %v932_v16 }
 0x400   :  { %2007 = vmatpush3.msra.mxu1 %v932_v16 }
 0x401   :  { %2070 = vmatmul.mubr.f32.gmra.mxu0 %v2591_v15  ;;  %v931_v15 = vld [vmem:[#allocation12] sm:$0xff] }
 0x402   :  { %2072 = vmatprep.mubr.f32.mxu0 %v2587_v14  ;;  %2008 = vmatprep.subr.mxu1 %v931_v15 }
 0x403   :  { %2009 = vmatpush3.msra.mxu1 %v931_v15  ;;  %v865_v15 = vmul.f32 %v2686_v46, %v2579_v12 }
 0x405   :  { %2073 = vmatmul.mubr.f32.gmra.mxu0 %v2583_v13  ;;  %v828_v13 = vstv %s1594_s29 }
 0x406   :  { %2075 = vmatprep.mubr.f32.mxu0 %v2579_v12 }
 0x409   :  { %2076 = vmatmul.mubr.f32.gmra.mxu0 %v2577_v10 }
 0x49d   :  { %v1968_v14 = vpop.f32.mrf.mxu0 }
 0x49e   :  { %v830_v17 = vmul.f32 %v1968_v14, %v828_v13  ;;  %v903_v23 = vmul.f32 %v1968_v14, %v901_v54 }
 0x49f   :  { %v746_v10 = vpop.f32.mrf.mxu0 }
 0x4a0   :  { %v829_v7 = vmul.f32 %v828_v13, %v746_v10  ;;  %v838_v31 = vadd.f32 %v830_v17, %v2748_v37  ;;  %v902_v20 = vmul.f32 %v901_v54, %v746_v10  ;;  %v911_v56 = vadd.f32 %v903_v23, %v2750_v38 }
 0x4a1   :  { %v1971_v61 = vpop.f32.mrf.mxu0  ;;  %v891_v38 = vmul.f32 %v2714_v60, %v2798_v44 }
 0x4a2   :  { %v837_v11 = vadd.f32 %v829_v7, %v2758_v49  ;;  %v832_v26 = vmul.f32 %v1971_v61, %v828_v13  ;;  %v2841_v0 = vadd.f32 %v1625_v62, %v838_v31  ;;  %v792_v49 = vmul.f32 %v2684_v45, %v2579_v12 }
 0x4a3   :  { %v756_v28 = vpop.f32.mrf.mxu0  ;;  %v905_v18 = vmul.f32 %v1971_v61, %v901_v54 }
 0x4a4   :  { %v831_v34 = vmul.f32 %v828_v13, %v756_v28  ;;  %v2837_v32 = vadd.f32 %v1625_v62, %v837_v11  ;;  %v840_v37 = vadd.f32 %v832_v26, %v2768_v57  ;;  %v809_v57 = vadd.f32 %v801_v63, %v792_v49  ;;  %v2915_v11 = vld [vmem:[%s2988_s11] ss:$0 sm:$0xff] }
 0x4a5   :  { %v1974_v39 = vpop.f32.mrf.mxu0  ;;  %v904_v55 = vmul.f32 %v901_v54, %v756_v28  ;;  %v2921_v28 = vld [vmem:[%s2986_s9] ss:$0 sm:$0xff]  ;;  %s2442_s9 = smov [#allocation16]  }
 0x4a6   :  { %v839_v29 = vadd.f32 %v831_v34, %v2778_v8  ;;  %v834_v41 = vmul.f32 %v1974_v39, %v828_v13  ;;  %2010 = vmatprep.mubr.f32.mxu1 %v2837_v32  ;;  %v2855_v19 = vadd.f32 %v1625_v62, %v840_v37  ;;  %v826_v21 = vadd.f32 %v818_v5, %v809_v57  ;;  %s1560_s11 = sshll.u32 %s2442_s9, 4  ;;  %s1561_s11 = int_to_ptr.vmem [resolvable:$true] %s1560_s11 }
 0x4a7   :  { %v766_v4 = vpop.f32.mrf.mxu0  ;;  %2011 = vmatmul.mubr.f32.vlgmr.msra.gmra.mxu1 %v2841_v0  ;;  %v912_v2 = vadd.f32 %v904_v55, %v2780_v9  ;;  %v907_v14 = vmul.f32 %v1974_v39, %v901_v54  ;;  %s2378_s20 = scalar_lea.vmem %s1561_s11, 1024  ;;  %p2383_p8 = scmp.lt.s32.totalorder %s1561_s11, %s1561_s11 }
 0x4a8   :  { %v833_v47 = vmul.f32 %v828_v13, %v766_v4  ;;  %v2851_v40 = vadd.f32 %v1625_v62, %v839_v29  ;;  %v842_v8 = vadd.f32 %v834_v41, %v2788_v35  ;;  %v906_v6 = vmul.f32 %v901_v54, %v766_v4  ;;  %p2379_p7 = scmp.ne.s32.totalorder %s1561_s11, %s2378_s20  ;;  %p2384_p9 = scmp.lt.s32.totalorder %s2378_s20, %s2378_s20 }
 0x4a9   :  { %v1977_v30 = vpop.f32.mrf.mxu0  ;;  %v915_v12 = vadd.f32 %v907_v14, %v2790_v36 }
 0x4aa   :  { %v841_v53 = vadd.f32 %v833_v47, %v2794_v42  ;;  %v836_v3 = vmul.f32 %v1977_v30, %v828_v13  ;;  %2013 = vmatprep.mubr.f32.mxu1 %v2851_v40  ;;  %v2862_v35 = vadd.f32 %v1625_v62, %v842_v8  ;;  %v910_v42 = vadd.f32 %v902_v20, %v2760_v50  ;;  %p2385_p10 = por %p2384_p9, %p2383_p8 }
 0x4ab   :  { %v776_v45 = vpop.f32.mrf.mxu0  ;;  %2014 = vmatmul.mubr.f32.gmra.mxu1 %v2855_v19  ;;  %v874_v50 = vmul.f32 %v2690_v48, %v2653_v33  ;;  %v914_v33 = vadd.f32 %v906_v6, %v2796_v43  ;;  %v909_v46 = vmul.f32 %v1977_v30, %v901_v54 }
 0x4ac   :  { %v835_v22 = vmul.f32 %v828_v13, %v776_v45  ;;  %v2859_v59 = vadd.f32 %v1625_v62, %v841_v53  ;;  %v844_v27 = vadd.f32 %v836_v3, %v2801_v51  ;;  %v1626_v51 = vld [vmem:[%s2984_s7 + $0x1] ss:$0 sm:$0xff]  ;;  %v913_v13 = vadd.f32 %v905_v18, %v2770_v58  ;;  %p2386_p11 = pnand %p2385_p10, %p2379_p7 }
 0x4ad   :  { %v2879_v16 = vadd.f32 %v1626_v51, %v910_v42  ;;  %v2888_v17 = vadd.f32 %v1626_v51, %v911_v56  ;;  %v882_v48 = vadd.f32 %v874_v50, %v865_v15  ;;  %v908_v9 = vmul.f32 %v901_v54, %v776_v45 }
 0x4ae   :  { %v843_v24 = vadd.f32 %v835_v22, %v826_v21  ;;  %2016 = vmatprep.mubr.f32.mxu1 %v2859_v59  ;;  %v2871_v1 = vadd.f32 %v1625_v62, %v844_v27  ;;  %v2891_v10 = vadd.f32 %v1626_v51, %v912_v2  ;;  %v2896_v60 = vadd.f32 %v1626_v51, %v913_v13 }
 0x4af   :  { %2017 = vmatmul.mubr.f32.gmra.mxu1 %v2862_v35  ;;  %v899_v7 = vadd.f32 %v891_v38, %v882_v48  ;;  %v2898_v44 = vadd.f32 %v1626_v51, %v914_v33  ;;  %v917_v43 = vadd.f32 %v909_v46, %v2803_v52  ;;  %v2903_v31 = vadd.f32 %v1626_v51, %v915_v12 }
 0x4b0   :  { %v2867_v25 = vadd.f32 %v1625_v62, %v843_v24 }
 0x4b1   :  { %v916_v58 = vadd.f32 %v908_v9, %v899_v7  ;;  %v2909_v36 = vadd.f32 %v1626_v51, %v917_v43 }
 0x4b2   :  { %2019 = vmatprep.mubr.f32.mxu1 %v2867_v25 }
 0x4b3   :  { %2020 = vmatmul.mubr.f32.gmra.mxu1 %v2871_v1  ;;  %v2905_v61 = vadd.f32 %v1626_v51, %v916_v58 }
 0x4b4   :  { %2022 = vmatprep.mubr.f32.mxu1 %v2879_v16 }
 0x4b7   :  { %2023 = vmatmul.mubr.f32.gmra.mxu1 %v2888_v17 }
 0x4b8   :  { %2025 = vmatprep.mubr.f32.mxu1 %v2891_v10 }
 0x4bb   :  { %2026 = vmatmul.mubr.f32.gmra.mxu1 %v2896_v60 }
 0x4bc   :  { %2028 = vmatprep.mubr.f32.mxu1 %v2898_v44 }
 0x4bd   :  { %v2068_v62 = vpop.f32.mrf.mxu0 }
 0x4be   :  { %v1210_v52 = vadd.f32 %v2068_v62, %v2915_v11 }
 0x4bf   :  { %2029 = vmatmul.mubr.f32.gmra.mxu1 %v2903_v31  ;;  %v1204_v26 = vpop.f32.mrf.mxu0 }
 0x4c0   :  { %2031 = vmatprep.mubr.f32.mxu1 %v2905_v61  ;;  %v1205_v34 = vadd.f32 %v2915_v11, %v1204_v26  ;;  %2134 = vtanh.f32 %v1210_v52 }
 0x4c1   :  { %v2071_v37 = vpop.f32.mrf.mxu0 }
 0x4c2   :  { %v1220_v4 = vadd.f32 %v2071_v37, %v2915_v11 }
 0x4c3   :  { %2032 = vmatmul.mubr.f32.gmra.mxu1 %v2909_v36  ;;  %v1214_v5 = vpop.f32.mrf.mxu0 }
 0x4c4   :  { %v1215_v57 = vadd.f32 %v2915_v11, %v1214_v5 }
 0x4c5   :  { %v2074_v20 = vpop.f32.mrf.mxu0 }
 0x4c6   :  { %v1230_v58 = vadd.f32 %v2074_v20, %v2915_v11 }
 0x4c7   :  { %v1224_v55 = vpop.f32.mrf.mxu0 }
 0x4c8   :  { %v1225_v38 = vadd.f32 %v2915_v11, %v1224_v55 }
 0x4c9   :  { %v2077_v14 = vpop.f32.mrf.mxu0 }
 0x4cb   :  { %v1234_v26 = vpop.f32.mrf.mxu0 }
 0x4cc   :  { %v1235_v37 = vadd.f32 %v2915_v11, %v1234_v26  ;;  %v1427_v26 = vld [vmem:[#allocation15 + $0x40] sm:$0xff] }
 0x4cd   :  { %v2135_v45 = vpop.eup %2134 }
 0x567   :  { %v2012_v63 = vpop.f32.mrf.mxu1 }
 0x568   :  { %v1026_v39 = vadd.f32 %v2012_v63, %v2921_v28 }
 0x569   :  { %v1020_v29 = vpop.f32.mrf.mxu1 }
 0x56a   :  { %2136 = vtanh.f32 %v1026_v39  ;;  %v1021_v41 = vadd.f32 %v2921_v28, %v1020_v29 }
 0x56b   :  { %2138 = vtanh.f32 %v1205_v34  ;;  %v2015_v49 = vpop.f32.mrf.mxu1 }
 0x56c   :  { %2140 = vtanh.f32 %v1021_v41  ;;  %v1036_v47 = vadd.f32 %v2015_v49, %v2921_v28 }
 0x56d   :  { %v1030_v54 = vpop.f32.mrf.mxu1 }
 0x56e   :  { %2142 = vtanh.f32 %v1036_v47  ;;  %v1031_v30 = vadd.f32 %v2921_v28, %v1030_v54  ;;  %v1240_v47 = vadd.f32 %v2077_v14, %v2915_v11 }
 0x56f   :  { %2144 = vtanh.f32 %v1220_v4  ;;  %v2018_v8 = vpop.f32.mrf.mxu1 }
 0x570   :  { %2146 = vtanh.f32 %v1031_v30  ;;  %v1046_v12 = vadd.f32 %v2018_v8, %v2921_v28 }
 0x571   :  { %v1040_v53 = vpop.f32.mrf.mxu1  ;;  %2148 = vtanh.f32 %v1215_v57 }
 0x572   :  { %v1041_v18 = vadd.f32 %v2921_v28, %v1040_v53 }
 0x573   :  { %v2021_v3 = vpop.f32.mrf.mxu1 }
 0x574   :  { %v1056_v49 = vadd.f32 %v2021_v3, %v2921_v28 }
 0x575   :  { %v1050_v21 = vpop.f32.mrf.mxu1 }
 0x576   :  { %v1051_v39 = vadd.f32 %v2921_v28, %v1050_v21 }
 0x577   :  { %v2137_v22 = vpop.eup %2136  ;;  %v2024_v27 = vpop.f32.mrf.mxu1 }
 0x578   :  { %v2139_v23 = vpop.eup %2138  ;;  %v1252_v24 = vmul.f32 %v2137_v22, %v2135_v45  ;;  %v1066_v56 = vadd.f32 %v2024_v27, %v2921_v28 }
 0x579   :  { %v2141_v42 = vpop.eup %2140  ;;  %v1060_v51 = vpop.f32.mrf.mxu1 }
 0x57a   :  { %1261 = vadd.xlane.f32.xlu1 %v1252_v24  ;;  %v1251_v50 = vmul.f32 %v2141_v42, %v2139_v23  ;;  %2150 = vtanh.f32 %v1066_v56  ;;  %v1061_v2 = vadd.f32 %v2921_v28, %v1060_v51 }
 0x57b   :  { %v2143_v6 = vpop.eup %2142  ;;  %v2027_v15 = vpop.f32.mrf.mxu1 }
 0x57c   :  { %1259 = vadd.xlane.f32.xlu0 %v1251_v50  ;;  %v2145_v13 = vpop.eup %2144  ;;  %2152 = vtanh.f32 %v1061_v2  ;;  %v1076_v33 = vadd.f32 %v2027_v15, %v2921_v28 }
 0x57d   :  { %2154 = vtanh.f32 %v1041_v18  ;;  %v1070_v48 = vpop.f32.mrf.mxu1  ;;  %v1254_v9 = vmul.f32 %v2145_v13, %v2143_v6  ;;  %v2147_v7 = vpop.eup %2146 }
 0x57e   :  { %2156 = vtanh.f32 %v1076_v33  ;;  %v1071_v46 = vadd.f32 %v2921_v28, %v1070_v48  ;;  %v2149_v62 = vpop.eup %2148 }
 0x57f   :  { %2158 = vtanh.f32 %v1225_v38  ;;  %v2030_v43 = vpop.f32.mrf.mxu1  ;;  %v1253_v63 = vmul.f32 %v2149_v62, %v2147_v7  ;;  %v1433_v7 = vld [vmem:[#allocation15 + $0x70] sm:$0xff] }
 0x580   :  { %1265 = vadd.xlane.f32.xlu0 %v1254_v9  ;;  %2160 = vtanh.f32 %v1071_v46  ;;  %v1086_v52 = vadd.f32 %v2030_v43, %v2921_v28  ;;  %v1434_v9 = vld [vmem:[#allocation15 + $0x78] sm:$0xff]  ;;  %v1431_v46 = vld [vmem:[#allocation15 + $0x60] sm:$0xff]  ;;  %v1429_v43 = vld [vmem:[#allocation15 + $0x50] sm:$0xff] }
 0x581   :  { %v1080_v34 = vpop.f32.mrf.mxu1  ;;  %2162 = vtanh.f32 %v1046_v12  ;;  %2078 = vmatprep.subr.mxu1 %v1434_v9  ;;  %v1432_v12 = vld [vmem:[#allocation15 + $0x68] sm:$0xff] }
 0x582   :  { %2164 = vtanh.f32 %v1230_v58  ;;  %v1081_v41 = vadd.f32 %v2921_v28, %v1080_v34  ;;  %2079 = vmatpush3.msra.mxu1 %v1434_v9  ;;  %v1430_v58 = vld [vmem:[#allocation15 + $0x58] sm:$0xff]  ;;  %v1425_v34 = vld [vmem:[#allocation15 + $0x30] sm:$0xff] }
 0x583   :  { %v2033_v29 = vpop.f32.mrf.mxu1  ;;  %2166 = vtanh.f32 %v1086_v52  ;;  %2080 = vmatprep.subr.mxu1 %v1433_v7  ;;  %v1426_v52 = vld [vmem:[#allocation15 + $0x38] sm:$0xff] }
 0x584   :  { %1263 = vadd.xlane.f32.xlu0 %v1253_v63  ;;  %2168 = vtanh.f32 %v1051_v39  ;;  %v1096_v22 = vadd.f32 %v2033_v29, %v2921_v28  ;;  %2081 = vmatpush3.msra.mxu1 %v1433_v7  ;;  %v1424_v63 = vld [vmem:[#allocation15 + $0x28] sm:$0xff]  ;;  %v1423_v39 = vld [vmem:[#allocation15 + $0x20] sm:$0xff]  ;;  %v1421_v29 = vld [vmem:[#allocation15 + $0x10] sm:$0xff] }
 0x585   :  { %v1090_v4 = vpop.f32.mrf.mxu1  ;;  %2170 = vtanh.f32 %v1235_v37  ;;  %2082 = vmatprep.subr.mxu1 %v1432_v12  ;;  %v1422_v37 = vld [vmem:[#allocation15 + $0x18] sm:$0xff] }
 0x586   :  { %2172 = vtanh.f32 %v1081_v41  ;;  %v1091_v54 = vadd.f32 %v2921_v28, %v1090_v4  ;;  %2083 = vmatpush3.msra.mxu1 %v1432_v12  ;;  %v1420_v41 = vld [vmem:[#allocation15 + $0x8] sm:$0xff]  ;;  %v1419_v4 = vld [vmem:[#allocation15] sm:$0xff] }
 0x587   :  { %v2151_v5 = vpop.eup %2150  ;;  %2174 = vtanh.f32 %v1056_v49  ;;  %2084 = vmatprep.subr.mxu1 %v1431_v46 }
 0x588   :  { %v1276_v30 = vmul.f32 %v2151_v5, %v2135_v45  ;;  %2176 = vtanh.f32 %v1240_v47  ;;  %2085 = vmatpush3.msra.mxu1 %v1431_v46 }
 0x589   :  { %v2153_v57 = vpop.eup %2152  ;;  %2178 = vtanh.f32 %v1091_v54  ;;  %2086 = vmatprep.subr.mxu1 %v1430_v58 }
 0x58a   :  { %v2155_v8 = vpop.eup %2154  ;;  %1285 = vadd.xlane.f32.xlu1 %v1276_v30  ;;  %v1275_v53 = vmul.f32 %v2153_v57, %v2139_v23  ;;  %2180 = vtanh.f32 %v1096_v22  ;;  %2087 = vmatpush3.msra.mxu1 %v1430_v58 }
 0x58b   :  { %v2157_v20 = vpop.eup %2156  ;;  %2088 = vmatprep.subr.mxu1 %v1429_v43 }
 0x58c   :  { %v2159_v21 = vpop.eup %2158  ;;  %1283 = vadd.xlane.f32.xlu0 %v1275_v53  ;;  %v1278_v3 = vmul.f32 %v2157_v20, %v2145_v13  ;;  %2089 = vmatpush3.msra.mxu1 %v1429_v43 }
 0x58d   :  { %v2161_v27 = vpop.eup %2160  ;;  %v1255_v11 = vmul.f32 %v2159_v21, %v2155_v8 }
 0x58e   :  { %1289 = vadd.xlane.f32.xlu1 %v1278_v3  ;;  %v2163_v24 = vpop.eup %2162  ;;  %v1277_v45 = vmul.f32 %v2161_v27, %v2149_v62  ;;  %v1428_v62 = vld [vmem:[#allocation15 + $0x48] sm:$0xff] }
 0x58f   :  { %v2165_v42 = vpop.eup %2164  ;;  %2090 = vmatprep.subr.mxu1 %v1428_v62 }
 0x590   :  { %1267 = vadd.xlane.f32.xlu0 %v1255_v11  ;;  %v2167_v55 = vpop.eup %2166  ;;  %v1256_v56 = vmul.f32 %v2165_v42, %v2163_v24  ;;  %2091 = vmatpush3.msra.mxu1 %v1428_v62 }
 0x591   :  { %v2169_v23 = vpop.eup %2168  ;;  %v1280_v51 = vmul.f32 %v2167_v55, %v2165_v42  ;;  %2092 = vmatprep.subr.mxu1 %v1427_v26 }
 0x592   :  { %1287 = vadd.xlane.f32.xlu1 %v1277_v45  ;;  %v2171_v18 = vpop.eup %2170  ;;  %2093 = vmatpush3.msra.mxu1 %v1427_v26 }
 0x593   :  { %v2173_v50 = vpop.eup %2172  ;;  %v1257_v28 = vmul.f32 %v2171_v18, %v2169_v23  ;;  %2094 = vmatprep.subr.mxu1 %v1426_v52 }
 0x594   :  { %1269 = vadd.xlane.f32.xlu0 %v1256_v56  ;;  %v2175_v2 = vpop.eup %2174  ;;  %v1279_v38 = vmul.f32 %v2173_v50, %v2159_v21  ;;  %2095 = vmatpush3.msra.mxu1 %v1426_v52 }
 0x595   :  { %v2177_v6 = vpop.eup %2176  ;;  %2096 = vmatprep.subr.mxu1 %v1425_v34 }
 0x596   :  { %1293 = vadd.xlane.f32.xlu1 %v1280_v51  ;;  %v2179_v15 = vpop.eup %2178  ;;  %v1258_v13 = vmul.f32 %v2177_v6, %v2175_v2  ;;  %2097 = vmatpush3.msra.mxu1 %v1425_v34 }
 0x597   :  { %v1281_v14 = vmul.f32 %v2179_v15, %v2171_v18  ;;  %v2181_v33 = vpop.eup %2180  ;;  %2098 = vmatprep.subr.mxu1 %v1424_v63 }
 0x598   :  { %1271 = vadd.xlane.f32.xlu0 %v1257_v28  ;;  %v1282_v48 = vmul.f32 %v2181_v33, %v2177_v6  ;;  %2099 = vmatpush3.msra.mxu1 %v1424_v63 }
 0x599   :  { %2100 = vmatprep.subr.mxu1 %v1423_v39 }
 0x59a   :  { %1291 = vadd.xlane.f32.xlu1 %v1279_v38  ;;  %2101 = vmatpush3.msra.mxu1 %v1423_v39 }
 0x59b   :  { %2102 = vmatprep.subr.mxu1 %v1422_v37 }
 0x59c   :  { %1273 = vadd.xlane.f32.xlu0 %v1258_v13  ;;  %2103 = vmatpush3.msra.mxu1 %v1422_v37 }
 0x59d   :  { %2104 = vmatprep.subr.mxu1 %v1421_v29 }
 0x59e   :  { %1295 = vadd.xlane.f32.xlu1 %v1281_v14  ;;  %2105 = vmatpush3.msra.mxu1 %v1421_v29 }
 0x59f   :  { %2106 = vmatprep.subr.mxu1 %v1420_v41 }
 0x5a0   :  { %2107 = vmatpush3.msra.mxu1 %v1420_v41 }
 0x5a1   :  { %2108 = vmatprep.subr.mxu1 %v1419_v4 }
 0x5a2   :  { %1297 = vadd.xlane.f32.xlu1 %v1282_v48  ;;  %2109 = vmatpush3.msra.mxu1 %v1419_v4 }
 0x603   :  { %v1262_v47 = vpop.xlane.xlu1 %1261 }
 0x605   :  { %v1260_v49 = vpop.xlane.xlu0 %1259 }
 0x609   :  { %v1266_v5 = vpop.xlane.xlu0 %1265 }
 0x60d   :  { %v1264_v54 = vpop.xlane.xlu0 %1263 }
 0x613   :  { %v1286_v30 = vpop.xlane.xlu1 %1285 }
 0x614   :  { %v1300_v57 = vmax.f32 %v1262_v47, %v1286_v30 }
 0x615   :  { %v1284_v8 = vpop.xlane.xlu0 %1283 }
 0x616   :  { %v1308_v53 = vsub.f32 %v1262_v47, %v1300_v57  ;;  %v1332_v20 = vsub.f32 %v1286_v30, %v1300_v57  ;;  %v1299_v21 = vmax.f32 %v1260_v49, %v1284_v8 }
 0x617   :  { %v1290_v22 = vpop.xlane.xlu1 %1289 }
 0x618   :  { %v1317_v3 = vmul.f32 1.442695, %v1308_v53  ;;  %v1341_v27 = vmul.f32 1.442695, %v1332_v20  ;;  %v1307_v11 = vsub.f32 %v1260_v49, %v1299_v21  ;;  %v1331_v24 = vsub.f32 %v1284_v8, %v1299_v21 }
 0x619   :  { %v1302_v42 = vmax.f32 %v1266_v5, %v1290_v22  ;;  %v1268_v45 = vpop.xlane.xlu0 %1267 }
 0x61a   :  { %2182 = vpow2.f32 %v1317_v3  ;;  %v1315_v55 = vmul.f32 1.442695, %v1307_v11  ;;  %v1339_v56 = vmul.f32 1.442695, %v1331_v24 }
 0x61b   :  { %2184 = vpow2.f32 %v1341_v27  ;;  %v1310_v23 = vsub.f32 %v1266_v5, %v1302_v42  ;;  %v1334_v18 = vsub.f32 %v1290_v22, %v1302_v42  ;;  %v1288_v51 = vpop.xlane.xlu1 %1287 }
 0x61c   :  { %2186 = vpow2.f32 %v1315_v55  ;;  %v1301_v50 = vmax.f32 %v1264_v54, %v1288_v51 }
 0x61d   :  { %2188 = vpow2.f32 %v1339_v56  ;;  %v1321_v28 = vmul.f32 1.442695, %v1310_v23  ;;  %v1345_v2 = vmul.f32 1.442695, %v1334_v18  ;;  %v1270_v15 = vpop.xlane.xlu0 %1269 }
 0x61e   :  { %v1309_v6 = vsub.f32 %v1264_v54, %v1301_v50  ;;  %v1333_v38 = vsub.f32 %v1288_v51, %v1301_v50 }
 0x61f   :  { %2190 = vpow2.f32 %v1321_v28  ;;  %v1294_v13 = vpop.xlane.xlu1 %1293 }
 0x620   :  { %2192 = vpow2.f32 %v1345_v2  ;;  %v1319_v14 = vmul.f32 1.442695, %v1309_v6  ;;  %v1343_v33 = vmul.f32 1.442695, %v1333_v38  ;;  %v1304_v48 = vmax.f32 %v1270_v15, %v1294_v13 }
 0x621   :  { %v1272_v62 = vpop.xlane.xlu0 %1271 }
 0x622   :  { %2194 = vpow2.f32 %v1319_v14  ;;  %v1312_v9 = vsub.f32 %v1270_v15, %v1304_v48  ;;  %v1336_v7 = vsub.f32 %v1294_v13, %v1304_v48 }
 0x623   :  { %2196 = vpow2.f32 %v1343_v33  ;;  %v1292_v12 = vpop.xlane.xlu1 %1291 }
 0x624   :  { %v1325_v46 = vmul.f32 1.442695, %v1312_v9  ;;  %v1349_v58 = vmul.f32 1.442695, %v1336_v7  ;;  %v1303_v43 = vmax.f32 %v1268_v45, %v1292_v12 }
 0x625   :  { %v1274_v57 = vpop.xlane.xlu0 %1273 }
 0x626   :  { %2198 = vpow2.f32 %v1325_v46  ;;  %v1311_v26 = vsub.f32 %v1268_v45, %v1303_v43  ;;  %v1335_v52 = vsub.f32 %v1292_v12, %v1303_v43 }
 0x627   :  { %v2183_v34 = vpop.eup %2182  ;;  %2200 = vpow2.f32 %v1349_v58  ;;  %v1296_v63 = vpop.xlane.xlu1 %1295 }
 0x628   :  { %v2185_v39 = vpop.eup %2184  ;;  %v1323_v37 = vmul.f32 1.442695, %v1311_v26  ;;  %v1347_v29 = vmul.f32 1.442695, %v1335_v52  ;;  %v1305_v41 = vmax.f32 %v1272_v62, %v1296_v63 }
 0x629   :  { %v2187_v4 = vpop.eup %2186  ;;  %v1356_v49 = vadd.f32 %v2185_v39, %v2183_v34 }
 0x62a   :  { %v2189_v5 = vpop.eup %2188  ;;  %2202 = vpow2.f32 %v1323_v37  ;;  %v1313_v47 = vsub.f32 %v1272_v62, %v1305_v41  ;;  %v1337_v54 = vsub.f32 %v1296_v63, %v1305_v41 }
 0x62b   :  { %2204 = vrcp.f32 %v1356_v49  ;;  %v1355_v30 = vadd.f32 %v2189_v5, %v2187_v4  ;;  %v1298_v8 = vpop.xlane.xlu1 %1297 }
 0x62c   :  { %v2191_v53 = vpop.eup %2190  ;;  %2206 = vpow2.f32 %v1347_v29  ;;  %v1327_v20 = vmul.f32 1.442695, %v1313_v47  ;;  %v1351_v21 = vmul.f32 1.442695, %v1337_v54  ;;  %v1306_v22 = vmax.f32 %v1274_v57, %v1298_v8 }
 0x62d   :  { %v2193_v3 = vpop.eup %2192  ;;  %2208 = vrcp.f32 %v1355_v30 }
 0x62e   :  { %v1358_v27 = vadd.f32 %v2193_v3, %v2191_v53  ;;  %2210 = vpow2.f32 %v1327_v20  ;;  %v1314_v11 = vsub.f32 %v1274_v57, %v1306_v22  ;;  %v1338_v24 = vsub.f32 %v1298_v8, %v1306_v22 }
 0x62f   :  { %v2195_v42 = vpop.eup %2194  ;;  %2212 = vpow2.f32 %v1351_v21 }
 0x630   :  { %v2197_v45 = vpop.eup %2196  ;;  %2214 = vrcp.f32 %v1358_v27  ;;  %v1329_v55 = vmul.f32 1.442695, %v1314_v11  ;;  %v1353_v56 = vmul.f32 1.442695, %v1338_v24 }
 0x631   :  { %v1357_v23 = vadd.f32 %v2197_v45, %v2195_v42 }
 0x632   :  { %2216 = vpow2.f32 %v1329_v55 }
 0x633   :  { %v2199_v18 = vpop.eup %2198  ;;  %2218 = vrcp.f32 %v1357_v23 }
 0x634   :  { %v2201_v51 = vpop.eup %2200  ;;  %2220 = vpow2.f32 %v1353_v56 }
 0x635   :  { %v1360_v50 = vadd.f32 %v2201_v51, %v2199_v18 }
 0x637   :  { %v2203_v28 = vpop.eup %2202  ;;  %2222 = vrcp.f32 %v1360_v50 }
 0x638   :  { %v2205_v2 = vpop.eup %2204 }
 0x639   :  { %v2207_v6 = vpop.eup %2206  ;;  %v1372_v38 = vmul.f32 %v2205_v2, %v2183_v34  ;;  %v1388_v15 = vmul.f32 %v2205_v2, %v2185_v39 }
 0x63a   :  { %v2209_v13 = vpop.eup %2208  ;;  %v1359_v14 = vadd.f32 %v2207_v6, %v2203_v28 }
 0x63b   :  { %v2211_v33 = vpop.eup %2210  ;;  %v1371_v48 = vmul.f32 %v2209_v13, %v2187_v4  ;;  %v1387_v9 = vmul.f32 %v2209_v13, %v2189_v5  ;;  %v1380_v7 = vmul.f32 %v1372_v38, %v2841_v0  ;;  %v1396_v12 = vmul.f32 %v1388_v15, %v2888_v17 }
 0x63c   :  { %v2213_v46 = vpop.eup %2212  ;;  %2224 = vrcp.f32 %v1359_v14 }
 0x63d   :  { %v2215_v58 = vpop.eup %2214  ;;  %v1361_v43 = vadd.f32 %v2213_v46, %v2211_v33  ;;  %v1379_v62 = vmul.f32 %v1371_v48, %v2837_v32  ;;  %v1395_v26 = vmul.f32 %v1387_v9, %v2879_v16  ;;  %v1404_v52 = vadd.f32 %v1396_v12, %v1380_v7 }
 0x63e   :  { %v1374_v34 = vmul.f32 %v2215_v58, %v2191_v53  ;;  %v1390_v63 = vmul.f32 %v2215_v58, %v2193_v3 }
 0x63f   :  { %v2217_v39 = vpop.eup %2216  ;;  %2226 = vrcp.f32 %v1361_v43  ;;  %v1403_v37 = vadd.f32 %v1395_v26, %v1379_v62  ;;  %1412 = vst [vmem:[#allocation16 + $0x8] sm:$0xff] %v1404_v52 }
 0x640   :  { %v2219_v29 = vpop.eup %2218  ;;  %v1382_v0 = vmul.f32 %v1374_v34, %v2855_v19  ;;  %v1398_v17 = vmul.f32 %v1390_v63, %v2896_v60 }
 0x641   :  { %v2221_v41 = vpop.eup %2220  ;;  %1411 = vst [vmem:[#allocation16] sm:$0xff] %v1403_v37  ;;  %2110 = vmatprep.mubr.f32.mxu1 %v1403_v37  ;;  %v1373_v4 = vmul.f32 %v2219_v29, %v2195_v42  ;;  %v1389_v49 = vmul.f32 %v2219_v29, %v2197_v45 }
 0x642   :  { %v1362_v32 = vadd.f32 %v2221_v41, %v2217_v39  ;;  %2111 = vmatmul.mubr.f32.vlgmr.msra.gmra.mxu1 %v1404_v52  ;;  %v1406_v16 = vadd.f32 %v1398_v17, %v1382_v0 }
 0x643   :  { %v1381_v5 = vmul.f32 %v1373_v4, %v2851_v40  ;;  %v1397_v47 = vmul.f32 %v1389_v49, %v2891_v10 }
 0x644   :  { %v2223_v54 = vpop.eup %2222  ;;  %2228 = vrcp.f32 %v1362_v32  ;;  %1414 = vst [vmem:[#allocation16 + $0x18] sm:$0xff] %v1406_v16 }
 0x645   :  { %v1405_v30 = vadd.f32 %v1397_v47, %v1381_v5  ;;  %v1376_v57 = vmul.f32 %v2223_v54, %v2199_v18  ;;  %v1392_v19 = vmul.f32 %v2223_v54, %v2201_v51 }
 0x647   :  { %1413 = vst [vmem:[#allocation16 + $0x10] sm:$0xff] %v1405_v30  ;;  %2113 = vmatprep.mubr.f32.mxu1 %v1405_v30  ;;  %v1384_v60 = vmul.f32 %v1376_v57, %v2862_v35  ;;  %v1400_v8 = vmul.f32 %v1392_v19, %v2903_v31 }
 0x648   :  { %2114 = vmatmul.mubr.f32.gmra.mxu1 %v1406_v16 }
 0x649   :  { %v2225_v53 = vpop.eup %2224  ;;  %v1408_v20 = vadd.f32 %v1400_v8, %v1384_v60 }
 0x64a   :  { %v1375_v21 = vmul.f32 %v2225_v53, %v2203_v28  ;;  %v1391_v22 = vmul.f32 %v2225_v53, %v2207_v6 }
 0x64b   :  { %1416 = vst [vmem:[#allocation16 + $0x28] sm:$0xff] %v1408_v20 }
 0x64c   :  { %v2227_v40 = vpop.eup %2226  ;;  %v1383_v10 = vmul.f32 %v1375_v21, %v2859_v59  ;;  %v1399_v3 = vmul.f32 %v1391_v22, %v2898_v44 }
 0x64d   :  { %v1377_v27 = vmul.f32 %v2227_v40, %v2211_v33  ;;  %v1393_v11 = vmul.f32 %v2227_v40, %v2213_v46 }
 0x64e   :  { %v1407_v24 = vadd.f32 %v1399_v3, %v1383_v10 }
 0x64f   :  { %v1385_v42 = vmul.f32 %v1377_v27, %v2867_v25  ;;  %v1401_v35 = vmul.f32 %v1393_v11, %v2905_v61 }
 0x650   :  { %1415 = vst [vmem:[#allocation16 + $0x20] sm:$0xff] %v1407_v24  ;;  %2116 = vmatprep.mubr.f32.mxu1 %v1407_v24 }
 0x651   :  { %v2229_v31 = vpop.eup %2228  ;;  %2117 = vmatmul.mubr.f32.gmra.mxu1 %v1408_v20  ;;  %v1409_v45 = vadd.f32 %v1401_v35, %v1385_v42 }
 0x652   :  { %v1378_v55 = vmul.f32 %v2229_v31, %v2217_v39  ;;  %v1394_v56 = vmul.f32 %v2229_v31, %v2221_v41 }
 0x653   :  { %1417 = vst [vmem:[#allocation16 + $0x30] sm:$0xff] %v1409_v45  ;;  %2119 = vmatprep.mubr.f32.mxu1 %v1409_v45 }
 0x654   :  { %v1386_v59 = vmul.f32 %v1378_v55, %v2871_v1  ;;  %v1402_v44 = vmul.f32 %v1394_v56, %v2909_v36 }
 0x656   :  { %v1410_v23 = vadd.f32 %v1402_v44, %v1386_v59 }
 0x658   :  { %1418 = vst [vmem:[#allocation16 + $0x38] sm:$0xff] %v1410_v23  ;;  %2120 = vmatmul.mubr.f32.gmra.mxu1 %v1410_v23 }
 0x659   :  { %2389 = shalt.err (!%p2386_p11)
}
 0x65a   :  { %1566 = dma.vmem_to_hbm [thread:$0]  %s1561_s11, 1024, %s2991_s14, [#allocation4], %s2434_s23, %s2434_s23, %s2435_s24  }
 0x65b   :  { %v1629_v25 = vld [vmem:[%s2990_s13] ss:$0 sm:$0xff]  ;;  %s2443_s13 = smov [#allocation17]  }
 0x65c   :  { %s1572_s14 = sshll.u32 %s2443_s13, 4  ;;  %s1573_s14 = int_to_ptr.vmem [resolvable:$true] %s1572_s14 }
 0x65d   :  { %s2398_s12 = scalar_lea.vmem %s1573_s14, 1024  ;;  %p2403_p13 = scmp.lt.s32.totalorder %s1573_s14, %s1573_s14 }
 0x65e   :  { %p2399_p12 = scmp.ne.s32.totalorder %s1573_s14, %s2398_s12  ;;  %p2404_p0 = scmp.lt.s32.totalorder %s2398_s12, %s2398_s12 }
 0x660   :  { %p2405_p1 = por %p2404_p0, %p2403_p13 }
 0x662   :  { %p2406_p2 = pnand %p2405_p1, %p2399_p12 }
 0x702   :  { %v2112_v1 = vpop.f32.mrf.mxu1 }
 0x703   :  { %v1514_v61 = vadd.f32 %v2112_v1, %v1629_v25 }
 0x704   :  { %v1508_v36 = vpop.f32.mrf.mxu1 }
 0x705   :  { %1548 = vst [vmem:[#allocation17 + $0x8] sm:$0xff] %v1514_v61  ;;  %v1509_v18 = vadd.f32 %v1629_v25, %v1508_v36 }
 0x707   :  { %1547 = vst [vmem:[#allocation17] sm:$0xff] %v1509_v18 }
 0x708   :  { %v2115_v51 = vpop.f32.mrf.mxu1 }
 0x709   :  { %v1524_v50 = vadd.f32 %v2115_v51, %v1629_v25 }
 0x70a   :  { %v1518_v28 = vpop.f32.mrf.mxu1 }
 0x70b   :  { %1550 = vst [vmem:[#allocation17 + $0x18] sm:$0xff] %v1524_v50  ;;  %v1519_v2 = vadd.f32 %v1629_v25, %v1518_v28 }
 0x70d   :  { %1549 = vst [vmem:[#allocation17 + $0x10] sm:$0xff] %v1519_v2 }
 0x711   :  { %v2118_v6 = vpop.f32.mrf.mxu1 }
 0x712   :  { %v1534_v38 = vadd.f32 %v2118_v6, %v1629_v25 }
 0x713   :  { %v1528_v15 = vpop.f32.mrf.mxu1 }
 0x714   :  { %1552 = vst [vmem:[#allocation17 + $0x28] sm:$0xff] %v1534_v38  ;;  %v1529_v13 = vadd.f32 %v1629_v25, %v1528_v15 }
 0x716   :  { %1551 = vst [vmem:[#allocation17 + $0x20] sm:$0xff] %v1529_v13 }
 0x718   :  { %v2121_v14 = vpop.f32.mrf.mxu1 }
 0x719   :  { %v1544_v33 = vadd.f32 %v2121_v14, %v1629_v25 }
 0x71a   :  { %v1538_v48 = vpop.f32.mrf.mxu1 }
 0x71b   :  { %1554 = vst [vmem:[#allocation17 + $0x38] sm:$0xff] %v1544_v33  ;;  %v1539_v9 = vadd.f32 %v1629_v25, %v1538_v48 }
 0x71d   :  { %1553 = vst [vmem:[#allocation17 + $0x30] sm:$0xff] %v1539_v9 }
 0x71e   :  { %2409 = shalt.err (!%p2406_p2)
}
 0x71f   :  { %1578 = dma.vmem_to_hbm [thread:$0]  %s1573_s14, 1024, %s2992_s15, [#allocation18], %s2434_s23, %s2434_s23, %s2435_s24  }
 0x720   :  { %2428 = dma.done.wait [#allocation4], 1024  }
 0x721   :  { %2429 = vsyncadd [#allocation4], 4294966272 }
 0x722   :  { %2430 = dma.done.wait [#allocation18], 1024  }
 0x723   :  { %2431 = vsyncadd [#allocation18], 4294966272 }
 0x724   :  { %1585 = vsyncpa [#allocation3], 1 }
 0x725   :  { %1586 = vsyncpa [#allocation8], 1 }
 0x726   :  { %1587 = vsyncpa [#allocation11], 1 }
 0x727   :  { %1588 = vsyncpa [#allocation14], 1 }
 0x728   :  { %1589 = vsyncpa [#allocation4], 1 }
 0x729   :  { %1590 = vsyncpa [#allocation18], 1 }
 0x72a   :  { %1591 = vsyncpa [#allocation5], 1 }

</bundles_post_ra>
